<compile_context>
chip_gen: v6e
topology: v6e:2x2x1
jax: 0.10.0
libtpu: 0.0.40
codegen_flags: <defaults>
</compile_context>

<pallas_src>
import functools
import math

import jax
import jax.numpy as jnp
from jax.experimental import pallas as pl
from jax.experimental.pallas import tpu as pltpu

EPS = 1e-5  # PyTorch LayerNorm default


def _layer_norm(x, gamma, beta):
    # x: (T, C) f32 ; gamma/beta: (1, C) f32
    mu = jnp.mean(x, axis=-1, keepdims=True)
    var = jnp.mean((x - mu) ** 2, axis=-1, keepdims=True)
    return (x - mu) * jax.lax.rsqrt(var + EPS) * gamma + beta


def _gelu_exact(x):
    # nn.GELU() default = exact erf-based GELU
    return 0.5 * x * (1.0 + jax.lax.erf(x * (1.0 / math.sqrt(2.0))))


def _chunks(total, tile):
    out, s = [], 0
    while s < total:
        out.append((s, min(tile, total - s)))
        s += tile
    return out


def _block_kernel(
    x_ref,                       # (1, T, C)   bf16 input activations (per batch)
    g1_ref, b1_ref,              # (1, C)      LayerNorm1 affine (f32)
    wqkv_ref,                    # (C, 3C)     fused QKV weight (bf16, [Q|K|V], head-major)
    wp_ref, bp_ref,              # (C, C) bf16 proj weight, (1, C) proj bias
    g2_ref, b2_ref,              # (1, C)      LayerNorm2 affine (f32)
    wfc1_ref, bfc1_ref,          # (C, Hd) bf16, (1, Hd)
    wfc2_ref, bfc2_ref,          # (Hd, C) bf16, (1, C)
    o_ref,                       # (1, T, C)   bf16 output
    qkv_scr,                     # scratch (3H, T, dh) bf16: per-head q (scaled), k, v
    oh_scr,                      # scratch (H, T, dh)  bf16: per-head attention outputs
    *, num_heads, q_tile, hd_tile,
):
    f32 = jnp.float32
    bf16 = jnp.bfloat16
    h_idx = pl.program_id(1)
    T, C = x_ref.shape[1], x_ref.shape[2]
    dh = C // num_heads
    Hd = wfc1_ref.shape[1]
    scale = 1.0 / math.sqrt(dh)

    # ---- phase 0 (first head of this batch tile): LN1 + one full-width QKV GEMM,
    #      scatter head-major slabs into scratch (static slices, done once).
    @pl.when(h_idx == 0)
    def _():
        xf = x_ref[0].astype(f32)                                    # (T, C)
        ln1 = _layer_norm(xf, g1_ref[...].astype(f32), b1_ref[...].astype(f32))
        qkv = jnp.dot(ln1.astype(bf16), wqkv_ref[...],
                      preferred_element_type=f32)                    # (T, 3C)
        for hh in range(num_heads):
            lo = hh * dh
            qkv_scr[hh] = (qkv[:, lo:lo + dh] * scale).astype(bf16)            # q (pre-scaled)
            qkv_scr[num_heads + hh] = qkv[:, C + lo:C + lo + dh].astype(bf16)  # k
            qkv_scr[2 * num_heads + hh] = qkv[:, 2 * C + lo:2 * C + lo + dh].astype(bf16)  # v

    # ---- per-head attention core (scores / softmax / P@V), query-row tiled.
    q = qkv_scr[h_idx]                    # (T, dh) bf16, already scaled by 1/sqrt(dh)
    k = qkv_scr[num_heads + h_idx]        # (T, dh) bf16
    v = qkv_scr[2 * num_heads + h_idx]    # (T, dh) bf16
    outs = []
    for (r0, tq) in _chunks(T, q_tile):
        s = jax.lax.dot_general(q[r0:r0 + tq], k, (((1,), (1,)), ((), ())),
                                preferred_element_type=f32)          # (tq, T)
        s = s - jnp.max(s, axis=-1, keepdims=True)
        p = jnp.exp(s)
        inv = pl.reciprocal(jnp.sum(p, axis=-1, keepdims=True), approx=True)
        oc = jnp.dot(p.astype(bf16), v, preferred_element_type=f32) * inv   # (tq, dh)
        outs.append(oc)
    o_h = outs[0] if len(outs) == 1 else jnp.concatenate(outs, axis=0)
    oh_scr[h_idx] = o_h.astype(bf16)

    # ---- phase 2 (last head): one full-width projection + residual, LN2, tiled MLP.
    @pl.when(h_idx == num_heads - 1)
    def _():
        xf = x_ref[0].astype(f32)
        attn = jnp.concatenate([oh_scr[i] for i in range(num_heads)], axis=-1)  # (T, C) bf16
        proj = jnp.dot(attn, wp_ref[...], preferred_element_type=f32)           # (T, C)
        x1 = xf + proj + bp_ref[...].astype(f32)
        h2 = _layer_norm(x1, g2_ref[...].astype(f32),
                         b2_ref[...].astype(f32)).astype(bf16)
        acc = x1 + bfc2_ref[...].astype(f32)                       # residual + fc2 bias
        for (c0, cs) in _chunks(Hd, hd_tile):
            f = jnp.dot(h2, wfc1_ref[:, c0:c0 + cs], preferred_element_type=f32)
            f = _gelu_exact(f + bfc1_ref[:, c0:c0 + cs].astype(f32))
            acc = acc + jnp.dot(f.astype(bf16), wfc2_ref[c0:c0 + cs, :],
                                preferred_element_type=f32)
        o_ref[0] = acc.astype(o_ref.dtype)


def _vmem_limit_bytes():
    # 3/4 of the physical per-core VMEM (safe on v7x's 64 MiB), capped.
    try:
        cap = int(pltpu.get_tpu_info().vmem_capacity_bytes)
        if cap <= 0:
            raise ValueError
    except Exception:
        cap = 64 * 1024 * 1024  # assume the smallest (v7x per-TC VMEM)
    return min((cap * 3) // 4, 96 * 1024 * 1024)


def block_forward(x, params, *, num_heads, q_tile=256, hd_tile=512):
    B, T, C = x.shape
    dh = C // num_heads
    assert dh * num_heads == C
    Hd = params["w_fc1"].shape[1]
    bf16 = jnp.bfloat16
    in_dtype = x.dtype

    # bf16 at the pallas_call boundary (activations + matmul weights).
    xb = x.astype(bf16)
    w_qkv = params["w_qkv"].astype(bf16)      # (C, 3C), PyTorch [Q|K|V] head-major layout
    w_proj = params["w_proj"].astype(bf16)    # (C, C)
    w_fc1 = params["w_fc1"].astype(bf16)      # (C, Hd)
    w_fc2 = params["w_fc2"].astype(bf16)      # (Hd, C)

    kernel = functools.partial(
        _block_kernel, num_heads=num_heads,
        q_tile=min(q_tile, T), hd_tile=min(hd_tile, Hd))

    def build(single_buffer_weights):
        def const(shape, weights=False):
            kw = {}
            if weights and single_buffer_weights:
                # constant block index -> a single VMEM buffer is sufficient
                kw["pipeline_mode"] = pl.Buffered(1)
            return pl.BlockSpec(shape, lambda b, h: (0,) * len(shape), **kw)

        return pl.pallas_call(
            kernel,
            out_shape=jax.ShapeDtypeStruct((B, T, C), bf16),
            grid_spec=pltpu.PrefetchScalarGridSpec(
                num_scalar_prefetch=0,
                grid=(B, num_heads),
                in_specs=[
                    pl.BlockSpec((1, T, C), lambda b, h: (b, 0, 0)),   # x
                    const((1, C)), const((1, C)),                      # ln1 gamma/beta
                    const((C, 3 * C), weights=True),                   # w_qkv (fused)
                    const((C, C), weights=True),                       # w_proj
                    const((1, C)),                                     # b_proj
                    const((1, C)), const((1, C)),                      # ln2 gamma/beta
                    const((C, Hd), weights=True), const((1, Hd)),      # w_fc1, b_fc1
                    const((Hd, C), weights=True), const((1, C)),       # w_fc2, b_fc2
                ],
                out_specs=pl.BlockSpec((1, T, C), lambda b, h: (b, 0, 0)),
                scratch_shapes=[
                    pltpu.VMEM((3 * num_heads, T, dh), bf16),  # per-head q/k/v slabs
                    pltpu.VMEM((num_heads, T, dh), bf16),      # per-head attn outputs
                ],
            ),
            compiler_params=pltpu.CompilerParams(
                dimension_semantics=("parallel", "arbitrary"),
                vmem_limit_bytes=_vmem_limit_bytes(),
            ),
        )

    args = (xb,
            params["ln1_g"], params["ln1_b"],
            w_qkv, w_proj, params["b_proj"],
            params["ln2_g"], params["ln2_b"],
            w_fc1, params["b_fc1"],
            w_fc2, params["b_fc2"])

    try:
        out = build(True)(*args)
        out = jax.block_until_ready(out)
    except Exception:
        # pipeline_mode=pl.Buffered(1) not supported on this build: default buffering.
        out = build(False)(*args)
    return out.astype(in_dtype)


# ---------------- pure-JAX reference for verification ----------------
def block_reference(x, params, *, num_heads):
    B, T, C = x.shape
    dh = C // num_heads
    # the kernel stores matmul weights as bf16; mirror that so the comparison
    # isolates kernel numerics (f32 math otherwise).
    rd = lambda w: w.astype(jnp.bfloat16).astype(jnp.float32)

    def ln(v, g, b):
        mu = jnp.mean(v, axis=-1, keepdims=True)
        var = jnp.mean((v - mu) ** 2, axis=-1, keepdims=True)
        return (v - mu) / jnp.sqrt(var + EPS) * g + b

    h = ln(x, params["ln1_g"], params["ln1_b"])
    qkv = h @ rd(params["w_qkv"])                                   # (B,T,3C)
    qkv = qkv.reshape(B, T, 3, num_heads, dh).transpose(2, 0, 3, 1, 4)
    q, k, v = qkv[0], qkv[1], qkv[2]                                # (B,H,T,dh)
    s = jnp.einsum("bhtd,bhsd->bhts", q, k) / math.sqrt(dh)
    p = jax.nn.softmax(s, axis=-1)
    o = jnp.einsum("bhts,bhsd->bhtd", p, v).transpose(0, 2, 1, 3).reshape(B, T, C)
    o = o @ rd(params["w_proj"]) + params["b_proj"]
    x = x + o

    h2 = ln(x, params["ln2_g"], params["ln2_b"])
    f = h2 @ rd(params["w_fc1"]) + params["b_fc1"]
    f = jax.nn.gelu(f, approximate=False)
    f = f @ rd(params["w_fc2"]) + params["b_fc2"]
    return x + f


def init_params(key, dim, mlp_hidden):
    ks = jax.random.split(key, 6)
    scale = 0.02
    return {
        "ln1_g": jnp.ones((1, dim), jnp.float32),
        "ln1_b": jnp.zeros((1, dim), jnp.float32),
        "w_qkv": scale * jax.random.normal(ks[0], (dim, 3 * dim), jnp.float32),
        "w_proj": scale * jax.random.normal(ks[1], (dim, dim), jnp.float32),
        "b_proj": scale * jax.random.normal(ks[2], (1, dim), jnp.float32),
        "ln2_g": jnp.ones((1, dim), jnp.float32),
        "ln2_b": jnp.zeros((1, dim), jnp.float32),
        "w_fc1": scale * jax.random.normal(ks[3], (dim, mlp_hidden), jnp.float32),
        "b_fc1": scale * jax.random.normal(ks[4], (1, mlp_hidden), jnp.float32),
        "w_fc2": scale * jax.random.normal(ks[5], (mlp_hidden, dim), jnp.float32),
        "b_fc2": jnp.zeros((1, dim), jnp.float32),
    }


if __name__ == "__main__":
    B, T, C = 2, 8, 32
    num_heads = 4
    mlp_hidden = int(C * 4.0)

    key = jax.random.PRNGKey(0)
    kx, kp = jax.random.split(key)
    x = jax.random.normal(kx, (B, T, C), jnp.float32)
    params = init_params(kp, C, mlp_hidden)

    out = block_forward(x, params, num_heads=num_heads)
    out = jax.block_until_ready(out)

    ref = block_reference(x, params, num_heads=num_heads)
    assert out.shape == (B, T, C)
    # bf16 activations/weights + approx reciprocal -> looser tolerance than pure f32
    assert jnp.allclose(out, ref, atol=2e-2, rtol=2e-2), (
        f"max abs err {jnp.max(jnp.abs(out - ref))}")

    print("KERNEL_OK")
</pallas_src>

<mosaic_0001>
module attributes {stable_mosaic.version = 11 : i64} {
  func.func @_block_kernel(%arg0: i32, %arg1: i32, %arg2: memref<1x8x32xbf16, #tpu.memory_space<vmem>>, %arg3: memref<1x32xf32, #tpu.memory_space<vmem>>, %arg4: memref<1x32xf32, #tpu.memory_space<vmem>>, %arg5: memref<32x96xbf16, #tpu.memory_space<vmem>>, %arg6: memref<32x32xbf16, #tpu.memory_space<vmem>>, %arg7: memref<1x32xf32, #tpu.memory_space<vmem>>, %arg8: memref<1x32xf32, #tpu.memory_space<vmem>>, %arg9: memref<1x32xf32, #tpu.memory_space<vmem>>, %arg10: memref<32x128xbf16, #tpu.memory_space<vmem>>, %arg11: memref<1x128xf32, #tpu.memory_space<vmem>>, %arg12: memref<128x32xbf16, #tpu.memory_space<vmem>>, %arg13: memref<1x32xf32, #tpu.memory_space<vmem>>, %arg14: memref<1x8x32xbf16, #tpu.memory_space<vmem>>, %arg15: memref<12x8x8xbf16, #tpu.memory_space<vmem>>, %arg16: memref<4x8x8xbf16, #tpu.memory_space<vmem>>) attributes {dimension_semantics = [#tpu.dimension_semantics<parallel>, #tpu.dimension_semantics<arbitrary>], iteration_bounds = array<i64: 2, 4>, scalar_prefetch = 0 : i64, scratch_operands = 2 : i64, tpu.core_type = #tpu.core_type<tc>, window_params = [{transform_indices = @transform_0, window_bounds = array<i64: 1, 8, 32>}, {pipeline_mode = #tpu.pipeline_mode<synchronous>, transform_indices = @transform_1, window_bounds = array<i64: 1, 32>}, {pipeline_mode = #tpu.pipeline_mode<synchronous>, transform_indices = @transform_2, window_bounds = array<i64: 1, 32>}, {pipeline_mode = #tpu.pipeline_mode<synchronous>, transform_indices = @transform_3, window_bounds = array<i64: 32, 96>}, {pipeline_mode = #tpu.pipeline_mode<synchronous>, transform_indices = @transform_4, window_bounds = array<i64: 32, 32>}, {pipeline_mode = #tpu.pipeline_mode<synchronous>, transform_indices = @transform_5, window_bounds = array<i64: 1, 32>}, {pipeline_mode = #tpu.pipeline_mode<synchronous>, transform_indices = @transform_6, window_bounds = array<i64: 1, 32>}, {pipeline_mode = #tpu.pipeline_mode<synchronous>, transform_indices = @transform_7, window_bounds = array<i64: 1, 32>}, {pipeline_mode = #tpu.pipeline_mode<synchronous>, transform_indices = @transform_8, window_bounds = array<i64: 32, 128>}, {pipeline_mode = #tpu.pipeline_mode<synchronous>, transform_indices = @transform_9, window_bounds = array<i64: 1, 128>}, {pipeline_mode = #tpu.pipeline_mode<synchronous>, transform_indices = @transform_10, window_bounds = array<i64: 128, 32>}, {pipeline_mode = #tpu.pipeline_mode<synchronous>, transform_indices = @transform_11, window_bounds = array<i64: 1, 32>}, {transform_indices = @transform_12, window_bounds = array<i64: 1, 8, 32>}]} {
    %c0_i32 = arith.constant 0 : i32
    %0 = arith.cmpi eq, %arg1, %c0_i32 : i32
    %1 = arith.extui %0 : i1 to i32
    %c0_i32_0 = arith.constant 0 : i32
    %2 = arith.cmpi ne, %1, %c0_i32_0 : i32
    scf.if %2 {
      %c0_12 = arith.constant 0 : index
      %c0_13 = arith.constant 0 : index
      %c0_14 = arith.constant 0 : index
      %35 = vector.load %arg2[%c0_12, %c0_13, %c0_14] : memref<1x8x32xbf16, #tpu.memory_space<vmem>>, vector<1x8x32xbf16>
      %36 = vector.shape_cast %35 : vector<1x8x32xbf16> to vector<8x32xbf16>
      %37 = arith.extf %36 : vector<8x32xbf16> to vector<8x32xf32>
      %c0_15 = arith.constant 0 : index
      %c0_16 = arith.constant 0 : index
      %38 = vector.load %arg3[%c0_15, %c0_16] : memref<1x32xf32, #tpu.memory_space<vmem>>, vector<1x32xf32>
      %c0_17 = arith.constant 0 : index
      %c0_18 = arith.constant 0 : index
      %39 = vector.load %arg4[%c0_17, %c0_18] : memref<1x32xf32, #tpu.memory_space<vmem>>, vector<1x32xf32>
      %cst_19 = arith.constant dense<0.000000e+00> : vector<8xf32>
      %40 = vector.multi_reduction <add>, %37, %cst_19 [1] : vector<8x32xf32> to vector<8xf32>
      %41 = vector.shape_cast %40 : vector<8xf32> to vector<8x1xf32>
      %cst_20 = arith.constant 3.200000e+01 : f32
      %42 = vector.broadcast %cst_20 : f32 to vector<8x1xf32>
      %43 = arith.divf %41, %42 : vector<8x1xf32>
      %44 = vector.broadcast %43 : vector<8x1xf32> to vector<8x32xf32>
      %45 = arith.subf %37, %44 : vector<8x32xf32>
      %46 = arith.mulf %45, %45 : vector<8x32xf32>
      %cst_21 = arith.constant dense<0.000000e+00> : vector<8xf32>
      %47 = vector.multi_reduction <add>, %46, %cst_21 [1] : vector<8x32xf32> to vector<8xf32>
      %48 = vector.shape_cast %47 : vector<8xf32> to vector<8x1xf32>
      %cst_22 = arith.constant 3.200000e+01 : f32
      %49 = vector.broadcast %cst_22 : f32 to vector<8x1xf32>
      %50 = arith.divf %48, %49 : vector<8x1xf32>
      %51 = vector.broadcast %43 : vector<8x1xf32> to vector<8x32xf32>
      %52 = arith.subf %37, %51 : vector<8x32xf32>
      %cst_23 = arith.constant 9.99999974E-6 : f32
      %53 = vector.broadcast %cst_23 : f32 to vector<8x1xf32>
      %54 = arith.addf %50, %53 : vector<8x1xf32>
      %55 = math.rsqrt %54 : vector<8x1xf32>
      %56 = vector.broadcast %55 : vector<8x1xf32> to vector<8x32xf32>
      %57 = arith.mulf %52, %56 : vector<8x32xf32>
      %58 = vector.broadcast %38 : vector<1x32xf32> to vector<8x32xf32>
      %59 = arith.mulf %57, %58 : vector<8x32xf32>
      %60 = vector.broadcast %39 : vector<1x32xf32> to vector<8x32xf32>
      %61 = arith.addf %59, %60 : vector<8x32xf32>
      %62 = arith.truncf %61 : vector<8x32xf32> to vector<8x32xbf16>
      %c0_24 = arith.constant 0 : index
      %c0_25 = arith.constant 0 : index
      %63 = vector.load %arg5[%c0_24, %c0_25] : memref<32x96xbf16, #tpu.memory_space<vmem>>, vector<32x96xbf16>
      %cst_26 = arith.constant dense<0.000000e+00> : vector<8x96xf32>
      %64 = tpu.matmul %62, %63, %cst_26 {dimension_numbers = #tpu.dot_dimension_numbers<[1], [0], [0], [1], [0, 0, 1, 1], [], []>} : vector<8x32xbf16>, vector<32x96xbf16>, vector<8x96xf32> -> vector<8x96xf32>
      %65 = vector.extract_strided_slice %64 {offsets = [0, 0], sizes = [8, 8], strides = [1, 1]} : vector<8x96xf32> to vector<8x8xf32>
      %cst_27 = arith.constant 0.353553385 : f32
      %66 = vector.broadcast %cst_27 : f32 to vector<8x8xf32>
      %67 = arith.mulf %65, %66 : vector<8x8xf32>
      %68 = arith.truncf %67 : vector<8x8xf32> to vector<8x8xbf16>
      %c0_28 = arith.constant 0 : index
      %c0_29 = arith.constant 0 : index
      %c0_30 = arith.constant 0 : index
      %69 = vector.load %arg15[%c0_28, %c0_29, %c0_30] : memref<12x8x8xbf16, #tpu.memory_space<vmem>>, vector<1x8x8xbf16>
      %70 = vector.shape_cast %69 : vector<1x8x8xbf16> to vector<8x8xbf16>
      %71 = vector.shape_cast %68 : vector<8x8xbf16> to vector<1x8x8xbf16>
      tpu.vector_store %arg15[%c0_28, %c0_29, %c0_30], %71 {strides = array<i32>} : memref<12x8x8xbf16, #tpu.memory_space<vmem>>, vector<1x8x8xbf16>,
      %72 = vector.extract_strided_slice %64 {offsets = [0, 32], sizes = [8, 8], strides = [1, 1]} : vector<8x96xf32> to vector<8x8xf32>
      %73 = arith.truncf %72 : vector<8x8xf32> to vector<8x8xbf16>
      %c4 = arith.constant 4 : index
      %c0_31 = arith.constant 0 : index
      %c0_32 = arith.constant 0 : index
      %74 = vector.load %arg15[%c4, %c0_31, %c0_32] : memref<12x8x8xbf16, #tpu.memory_space<vmem>>, vector<1x8x8xbf16>
      %75 = vector.shape_cast %74 : vector<1x8x8xbf16> to vector<8x8xbf16>
      %76 = vector.shape_cast %73 : vector<8x8xbf16> to vector<1x8x8xbf16>
      tpu.vector_store %arg15[%c4, %c0_31, %c0_32], %76 {strides = array<i32>} : memref<12x8x8xbf16, #tpu.memory_space<vmem>>, vector<1x8x8xbf16>,
      %77 = vector.extract_strided_slice %64 {offsets = [0, 64], sizes = [8, 8], strides = [1, 1]} : vector<8x96xf32> to vector<8x8xf32>
      %78 = arith.truncf %77 : vector<8x8xf32> to vector<8x8xbf16>
      %c8 = arith.constant 8 : index
      %c0_33 = arith.constant 0 : index
      %c0_34 = arith.constant 0 : index
      %79 = vector.load %arg15[%c8, %c0_33, %c0_34] : memref<12x8x8xbf16, #tpu.memory_space<vmem>>, vector<1x8x8xbf16>
      %80 = vector.shape_cast %79 : vector<1x8x8xbf16> to vector<8x8xbf16>
      %81 = vector.shape_cast %78 : vector<8x8xbf16> to vector<1x8x8xbf16>
      tpu.vector_store %arg15[%c8, %c0_33, %c0_34], %81 {strides = array<i32>} : memref<12x8x8xbf16, #tpu.memory_space<vmem>>, vector<1x8x8xbf16>,
      %82 = vector.extract_strided_slice %64 {offsets = [0, 8], sizes = [8, 8], strides = [1, 1]} : vector<8x96xf32> to vector<8x8xf32>
      %cst_35 = arith.constant 0.353553385 : f32
      %83 = vector.broadcast %cst_35 : f32 to vector<8x8xf32>
      %84 = arith.mulf %82, %83 : vector<8x8xf32>
      %85 = arith.truncf %84 : vector<8x8xf32> to vector<8x8xbf16>
      %c1 = arith.constant 1 : index
      %c0_36 = arith.constant 0 : index
      %c0_37 = arith.constant 0 : index
      %86 = vector.load %arg15[%c1, %c0_36, %c0_37] : memref<12x8x8xbf16, #tpu.memory_space<vmem>>, vector<1x8x8xbf16>
      %87 = vector.shape_cast %86 : vector<1x8x8xbf16> to vector<8x8xbf16>
      %88 = vector.shape_cast %85 : vector<8x8xbf16> to vector<1x8x8xbf16>
      tpu.vector_store %arg15[%c1, %c0_36, %c0_37], %88 {strides = array<i32>} : memref<12x8x8xbf16, #tpu.memory_space<vmem>>, vector<1x8x8xbf16>,
      %89 = vector.extract_strided_slice %64 {offsets = [0, 40], sizes = [8, 8], strides = [1, 1]} : vector<8x96xf32> to vector<8x8xf32>
      %90 = arith.truncf %89 : vector<8x8xf32> to vector<8x8xbf16>
      %c5 = arith.constant 5 : index
      %c0_38 = arith.constant 0 : index
      %c0_39 = arith.constant 0 : index
      %91 = vector.load %arg15[%c5, %c0_38, %c0_39] : memref<12x8x8xbf16, #tpu.memory_space<vmem>>, vector<1x8x8xbf16>
      %92 = vector.shape_cast %91 : vector<1x8x8xbf16> to vector<8x8xbf16>
      %93 = vector.shape_cast %90 : vector<8x8xbf16> to vector<1x8x8xbf16>
      tpu.vector_store %arg15[%c5, %c0_38, %c0_39], %93 {strides = array<i32>} : memref<12x8x8xbf16, #tpu.memory_space<vmem>>, vector<1x8x8xbf16>,
      %94 = vector.extract_strided_slice %64 {offsets = [0, 72], sizes = [8, 8], strides = [1, 1]} : vector<8x96xf32> to vector<8x8xf32>
      %95 = arith.truncf %94 : vector<8x8xf32> to vector<8x8xbf16>
      %c9 = arith.constant 9 : index
      %c0_40 = arith.constant 0 : index
      %c0_41 = arith.constant 0 : index
      %96 = vector.load %arg15[%c9, %c0_40, %c0_41] : memref<12x8x8xbf16, #tpu.memory_space<vmem>>, vector<1x8x8xbf16>
      %97 = vector.shape_cast %96 : vector<1x8x8xbf16> to vector<8x8xbf16>
      %98 = vector.shape_cast %95 : vector<8x8xbf16> to vector<1x8x8xbf16>
      tpu.vector_store %arg15[%c9, %c0_40, %c0_41], %98 {strides = array<i32>} : memref<12x8x8xbf16, #tpu.memory_space<vmem>>, vector<1x8x8xbf16>,
      %99 = vector.extract_strided_slice %64 {offsets = [0, 16], sizes = [8, 8], strides = [1, 1]} : vector<8x96xf32> to vector<8x8xf32>
      %cst_42 = arith.constant 0.353553385 : f32
      %100 = vector.broadcast %cst_42 : f32 to vector<8x8xf32>
      %101 = arith.mulf %99, %100 : vector<8x8xf32>
      %102 = arith.truncf %101 : vector<8x8xf32> to vector<8x8xbf16>
      %c2 = arith.constant 2 : index
      %c0_43 = arith.constant 0 : index
      %c0_44 = arith.constant 0 : index
      %103 = vector.load %arg15[%c2, %c0_43, %c0_44] : memref<12x8x8xbf16, #tpu.memory_space<vmem>>, vector<1x8x8xbf16>
      %104 = vector.shape_cast %103 : vector<1x8x8xbf16> to vector<8x8xbf16>
      %105 = vector.shape_cast %102 : vector<8x8xbf16> to vector<1x8x8xbf16>
      tpu.vector_store %arg15[%c2, %c0_43, %c0_44], %105 {strides = array<i32>} : memref<12x8x8xbf16, #tpu.memory_space<vmem>>, vector<1x8x8xbf16>,
      %106 = vector.extract_strided_slice %64 {offsets = [0, 48], sizes = [8, 8], strides = [1, 1]} : vector<8x96xf32> to vector<8x8xf32>
      %107 = arith.truncf %106 : vector<8x8xf32> to vector<8x8xbf16>
      %c6 = arith.constant 6 : index
      %c0_45 = arith.constant 0 : index
      %c0_46 = arith.constant 0 : index
      %108 = vector.load %arg15[%c6, %c0_45, %c0_46] : memref<12x8x8xbf16, #tpu.memory_space<vmem>>, vector<1x8x8xbf16>
      %109 = vector.shape_cast %108 : vector<1x8x8xbf16> to vector<8x8xbf16>
      %110 = vector.shape_cast %107 : vector<8x8xbf16> to vector<1x8x8xbf16>
      tpu.vector_store %arg15[%c6, %c0_45, %c0_46], %110 {strides = array<i32>} : memref<12x8x8xbf16, #tpu.memory_space<vmem>>, vector<1x8x8xbf16>,
      %111 = vector.extract_strided_slice %64 {offsets = [0, 80], sizes = [8, 8], strides = [1, 1]} : vector<8x96xf32> to vector<8x8xf32>
      %112 = arith.truncf %111 : vector<8x8xf32> to vector<8x8xbf16>
      %c10 = arith.constant 10 : index
      %c0_47 = arith.constant 0 : index
      %c0_48 = arith.constant 0 : index
      %113 = vector.load %arg15[%c10, %c0_47, %c0_48] : memref<12x8x8xbf16, #tpu.memory_space<vmem>>, vector<1x8x8xbf16>
      %114 = vector.shape_cast %113 : vector<1x8x8xbf16> to vector<8x8xbf16>
      %115 = vector.shape_cast %112 : vector<8x8xbf16> to vector<1x8x8xbf16>
      tpu.vector_store %arg15[%c10, %c0_47, %c0_48], %115 {strides = array<i32>} : memref<12x8x8xbf16, #tpu.memory_space<vmem>>, vector<1x8x8xbf16>,
      %116 = vector.extract_strided_slice %64 {offsets = [0, 24], sizes = [8, 8], strides = [1, 1]} : vector<8x96xf32> to vector<8x8xf32>
      %cst_49 = arith.constant 0.353553385 : f32
      %117 = vector.broadcast %cst_49 : f32 to vector<8x8xf32>
      %118 = arith.mulf %116, %117 : vector<8x8xf32>
      %119 = arith.truncf %118 : vector<8x8xf32> to vector<8x8xbf16>
      %c3 = arith.constant 3 : index
      %c0_50 = arith.constant 0 : index
      %c0_51 = arith.constant 0 : index
      %120 = vector.load %arg15[%c3, %c0_50, %c0_51] : memref<12x8x8xbf16, #tpu.memory_space<vmem>>, vector<1x8x8xbf16>
      %121 = vector.shape_cast %120 : vector<1x8x8xbf16> to vector<8x8xbf16>
      %122 = vector.shape_cast %119 : vector<8x8xbf16> to vector<1x8x8xbf16>
      tpu.vector_store %arg15[%c3, %c0_50, %c0_51], %122 {strides = array<i32>} : memref<12x8x8xbf16, #tpu.memory_space<vmem>>, vector<1x8x8xbf16>,
      %123 = vector.extract_strided_slice %64 {offsets = [0, 56], sizes = [8, 8], strides = [1, 1]} : vector<8x96xf32> to vector<8x8xf32>
      %124 = arith.truncf %123 : vector<8x8xf32> to vector<8x8xbf16>
      %c7 = arith.constant 7 : index
      %c0_52 = arith.constant 0 : index
      %c0_53 = arith.constant 0 : index
      %125 = vector.load %arg15[%c7, %c0_52, %c0_53] : memref<12x8x8xbf16, #tpu.memory_space<vmem>>, vector<1x8x8xbf16>
      %126 = vector.shape_cast %125 : vector<1x8x8xbf16> to vector<8x8xbf16>
      %127 = vector.shape_cast %124 : vector<8x8xbf16> to vector<1x8x8xbf16>
      tpu.vector_store %arg15[%c7, %c0_52, %c0_53], %127 {strides = array<i32>} : memref<12x8x8xbf16, #tpu.memory_space<vmem>>, vector<1x8x8xbf16>,
      %128 = vector.extract_strided_slice %64 {offsets = [0, 88], sizes = [8, 8], strides = [1, 1]} : vector<8x96xf32> to vector<8x8xf32>
      %129 = arith.truncf %128 : vector<8x8xf32> to vector<8x8xbf16>
      %c11 = arith.constant 11 : index
      %c0_54 = arith.constant 0 : index
      %c0_55 = arith.constant 0 : index
      %130 = vector.load %arg15[%c11, %c0_54, %c0_55] : memref<12x8x8xbf16, #tpu.memory_space<vmem>>, vector<1x8x8xbf16>
      %131 = vector.shape_cast %130 : vector<1x8x8xbf16> to vector<8x8xbf16>
      %132 = vector.shape_cast %129 : vector<8x8xbf16> to vector<1x8x8xbf16>
      tpu.vector_store %arg15[%c11, %c0_54, %c0_55], %132 {strides = array<i32>} : memref<12x8x8xbf16, #tpu.memory_space<vmem>>, vector<1x8x8xbf16>,
    } else {
    }
    %3 = arith.index_cast %arg1 : i32 to index
    %c0 = arith.constant 0 : index
    %c0_1 = arith.constant 0 : index
    %4 = vector.load %arg15[%3, %c0, %c0_1] : memref<12x8x8xbf16, #tpu.memory_space<vmem>>, vector<1x8x8xbf16>
    %5 = vector.shape_cast %4 : vector<1x8x8xbf16> to vector<8x8xbf16>
    %c4_i32 = arith.constant 4 : i32
    %6 = arith.addi %c4_i32, %arg1 : i32
    %7 = arith.index_cast %6 : i32 to index
    %c0_2 = arith.constant 0 : index
    %c0_3 = arith.constant 0 : index
    %8 = vector.load %arg15[%7, %c0_2, %c0_3] : memref<12x8x8xbf16, #tpu.memory_space<vmem>>, vector<1x8x8xbf16>
    %9 = vector.shape_cast %8 : vector<1x8x8xbf16> to vector<8x8xbf16>
    %c8_i32 = arith.constant 8 : i32
    %10 = arith.addi %c8_i32, %arg1 : i32
    %11 = arith.index_cast %10 : i32 to index
    %c0_4 = arith.constant 0 : index
    %c0_5 = arith.constant 0 : index
    %12 = vector.load %arg15[%11, %c0_4, %c0_5] : memref<12x8x8xbf16, #tpu.memory_space<vmem>>, vector<1x8x8xbf16>
    %13 = vector.shape_cast %12 : vector<1x8x8xbf16> to vector<8x8xbf16>
    %cst = arith.constant dense<0.000000e+00> : vector<8x8xf32>
    %14 = tpu.matmul %5, %9, %cst {dimension_numbers = #tpu.dot_dimension_numbers<[1], [1], [0], [0], [0, 0, 1, 0], [], []>} : vector<8x8xbf16>, vector<8x8xbf16>, vector<8x8xf32> -> vector<8x8xf32>
    %cst_6 = arith.constant dense<0xFF800000> : vector<8xf32>
    %15 = vector.multi_reduction <maximumf>, %14, %cst_6 [1] : vector<8x8xf32> to vector<8xf32>
    %16 = vector.shape_cast %15 : vector<8xf32> to vector<8x1xf32>
    %17 = vector.broadcast %16 : vector<8x1xf32> to vector<8x8xf32>
    %18 = arith.subf %14, %17 : vector<8x8xf32>
    %19 = math.exp %18 : vector<8x8xf32>
    %cst_7 = arith.constant dense<0.000000e+00> : vector<8xf32>
    %20 = vector.multi_reduction <add>, %19, %cst_7 [1] : vector<8x8xf32> to vector<8xf32>
    %21 = vector.shape_cast %20 : vector<8xf32> to vector<8x1xf32>
    %22 = tpu.reciprocal %21 {approx = true} : vector<8x1xf32> -> vector<8x1xf32>
    %23 = arith.truncf %19 : vector<8x8xf32> to vector<8x8xbf16>
    %cst_8 = arith.constant dense<0.000000e+00> : vector<8x8xf32>
    %24 = tpu.matmul %23, %13, %cst_8 {dimension_numbers = #tpu.dot_dimension_numbers<[1], [0], [0], [1], [0, 0, 1, 1], [], []>} : vector<8x8xbf16>, vector<8x8xbf16>, vector<8x8xf32> -> vector<8x8xf32>
    %25 = vector.broadcast %22 : vector<8x1xf32> to vector<8x8xf32>
    %26 = arith.mulf %24, %25 : vector<8x8xf32>
    %27 = arith.truncf %26 : vector<8x8xf32> to vector<8x8xbf16>
    %28 = arith.index_cast %arg1 : i32 to index
    %c0_9 = arith.constant 0 : index
    %c0_10 = arith.constant 0 : index
    %29 = vector.load %arg16[%28, %c0_9, %c0_10] : memref<4x8x8xbf16, #tpu.memory_space<vmem>>, vector<1x8x8xbf16>
    %30 = vector.shape_cast %29 : vector<1x8x8xbf16> to vector<8x8xbf16>
    %31 = vector.shape_cast %27 : vector<8x8xbf16> to vector<1x8x8xbf16>
    tpu.vector_store %arg16[%28, %c0_9, %c0_10], %31 {strides = array<i32>} : memref<4x8x8xbf16, #tpu.memory_space<vmem>>, vector<1x8x8xbf16>,
    %c3_i32 = arith.constant 3 : i32
    %32 = arith.cmpi eq, %arg1, %c3_i32 : i32
    %33 = arith.extui %32 : i1 to i32
    %c0_i32_11 = arith.constant 0 : i32
    %34 = arith.cmpi ne, %33, %c0_i32_11 : i32
    scf.if %34 {
      %c0_12 = arith.constant 0 : index
      %c0_13 = arith.constant 0 : index
      %c0_14 = arith.constant 0 : index
      %35 = vector.load %arg2[%c0_12, %c0_13, %c0_14] : memref<1x8x32xbf16, #tpu.memory_space<vmem>>, vector<1x8x32xbf16>
      %36 = vector.shape_cast %35 : vector<1x8x32xbf16> to vector<8x32xbf16>
      %37 = arith.extf %36 : vector<8x32xbf16> to vector<8x32xf32>
      %c0_15 = arith.constant 0 : index
      %c0_16 = arith.constant 0 : index
      %c0_17 = arith.constant 0 : index
      %38 = vector.load %arg16[%c0_15, %c0_16, %c0_17] : memref<4x8x8xbf16, #tpu.memory_space<vmem>>, vector<1x8x8xbf16>
      %39 = vector.shape_cast %38 : vector<1x8x8xbf16> to vector<8x8xbf16>
      %c1 = arith.constant 1 : index
      %c0_18 = arith.constant 0 : index
      %c0_19 = arith.constant 0 : index
      %40 = vector.load %arg16[%c1, %c0_18, %c0_19] : memref<4x8x8xbf16, #tpu.memory_space<vmem>>, vector<1x8x8xbf16>
      %41 = vector.shape_cast %40 : vector<1x8x8xbf16> to vector<8x8xbf16>
      %c2 = arith.constant 2 : index
      %c0_20 = arith.constant 0 : index
      %c0_21 = arith.constant 0 : index
      %42 = vector.load %arg16[%c2, %c0_20, %c0_21] : memref<4x8x8xbf16, #tpu.memory_space<vmem>>, vector<1x8x8xbf16>
      %43 = vector.shape_cast %42 : vector<1x8x8xbf16> to vector<8x8xbf16>
      %c3 = arith.constant 3 : index
      %c0_22 = arith.constant 0 : index
      %c0_23 = arith.constant 0 : index
      %44 = vector.load %arg16[%c3, %c0_22, %c0_23] : memref<4x8x8xbf16, #tpu.memory_space<vmem>>, vector<1x8x8xbf16>
      %45 = vector.shape_cast %44 : vector<1x8x8xbf16> to vector<8x8xbf16>
      %46 = tpu.concatenate %39, %41, %43, %45 in 1 : vector<8x8xbf16>, vector<8x8xbf16>, vector<8x8xbf16>, vector<8x8xbf16> -> vector<8x32xbf16>
      %c0_24 = arith.constant 0 : index
      %c0_25 = arith.constant 0 : index
      %47 = vector.load %arg6[%c0_24, %c0_25] : memref<32x32xbf16, #tpu.memory_space<vmem>>, vector<32x32xbf16>
      %cst_26 = arith.constant dense<0.000000e+00> : vector<8x32xf32>
      %48 = tpu.matmul %46, %47, %cst_26 {dimension_numbers = #tpu.dot_dimension_numbers<[1], [0], [0], [1], [0, 0, 1, 1], [], []>} : vector<8x32xbf16>, vector<32x32xbf16>, vector<8x32xf32> -> vector<8x32xf32>
      %49 = arith.addf %37, %48 : vector<8x32xf32>
      %c0_27 = arith.constant 0 : index
      %c0_28 = arith.constant 0 : index
      %50 = vector.load %arg7[%c0_27, %c0_28] : memref<1x32xf32, #tpu.memory_space<vmem>>, vector<1x32xf32>
      %51 = vector.broadcast %50 : vector<1x32xf32> to vector<8x32xf32>
      %52 = arith.addf %49, %51 : vector<8x32xf32>
      %c0_29 = arith.constant 0 : index
      %c0_30 = arith.constant 0 : index
      %53 = vector.load %arg8[%c0_29, %c0_30] : memref<1x32xf32, #tpu.memory_space<vmem>>, vector<1x32xf32>
      %c0_31 = arith.constant 0 : index
      %c0_32 = arith.constant 0 : index
      %54 = vector.load %arg9[%c0_31, %c0_32] : memref<1x32xf32, #tpu.memory_space<vmem>>, vector<1x32xf32>
      %cst_33 = arith.constant dense<0.000000e+00> : vector<8xf32>
      %55 = vector.multi_reduction <add>, %52, %cst_33 [1] : vector<8x32xf32> to vector<8xf32>
      %56 = vector.shape_cast %55 : vector<8xf32> to vector<8x1xf32>
      %cst_34 = arith.constant 3.200000e+01 : f32
      %57 = vector.broadcast %cst_34 : f32 to vector<8x1xf32>
      %58 = arith.divf %56, %57 : vector<8x1xf32>
      %59 = vector.broadcast %58 : vector<8x1xf32> to vector<8x32xf32>
      %60 = arith.subf %52, %59 : vector<8x32xf32>
      %61 = arith.mulf %60, %60 : vector<8x32xf32>
      %cst_35 = arith.constant dense<0.000000e+00> : vector<8xf32>
      %62 = vector.multi_reduction <add>, %61, %cst_35 [1] : vector<8x32xf32> to vector<8xf32>
      %63 = vector.shape_cast %62 : vector<8xf32> to vector<8x1xf32>
      %cst_36 = arith.constant 3.200000e+01 : f32
      %64 = vector.broadcast %cst_36 : f32 to vector<8x1xf32>
      %65 = arith.divf %63, %64 : vector<8x1xf32>
      %66 = vector.broadcast %58 : vector<8x1xf32> to vector<8x32xf32>
      %67 = arith.subf %52, %66 : vector<8x32xf32>
      %cst_37 = arith.constant 9.99999974E-6 : f32
      %68 = vector.broadcast %cst_37 : f32 to vector<8x1xf32>
      %69 = arith.addf %65, %68 : vector<8x1xf32>
      %70 = math.rsqrt %69 : vector<8x1xf32>
      %71 = vector.broadcast %70 : vector<8x1xf32> to vector<8x32xf32>
      %72 = arith.mulf %67, %71 : vector<8x32xf32>
      %73 = vector.broadcast %53 : vector<1x32xf32> to vector<8x32xf32>
      %74 = arith.mulf %72, %73 : vector<8x32xf32>
      %75 = vector.broadcast %54 : vector<1x32xf32> to vector<8x32xf32>
      %76 = arith.addf %74, %75 : vector<8x32xf32>
      %77 = arith.truncf %76 : vector<8x32xf32> to vector<8x32xbf16>
      %c0_38 = arith.constant 0 : index
      %c0_39 = arith.constant 0 : index
      %78 = vector.load %arg13[%c0_38, %c0_39] : memref<1x32xf32, #tpu.memory_space<vmem>>, vector<1x32xf32>
      %79 = vector.broadcast %78 : vector<1x32xf32> to vector<8x32xf32>
      %80 = arith.addf %52, %79 : vector<8x32xf32>
      %c0_40 = arith.constant 0 : index
      %c0_41 = arith.constant 0 : index
      %81 = vector.load %arg10[%c0_40, %c0_41] : memref<32x128xbf16, #tpu.memory_space<vmem>>, vector<32x128xbf16>
      %cst_42 = arith.constant dense<0.000000e+00> : vector<8x128xf32>
      %82 = tpu.matmul %77, %81, %cst_42 {dimension_numbers = #tpu.dot_dimension_numbers<[1], [0], [0], [1], [0, 0, 1, 1], [], []>} : vector<8x32xbf16>, vector<32x128xbf16>, vector<8x128xf32> -> vector<8x128xf32>
      %c0_43 = arith.constant 0 : index
      %c0_44 = arith.constant 0 : index
      %83 = vector.load %arg11[%c0_43, %c0_44] : memref<1x128xf32, #tpu.memory_space<vmem>>, vector<1x128xf32>
      %84 = vector.broadcast %83 : vector<1x128xf32> to vector<8x128xf32>
      %85 = arith.addf %82, %84 : vector<8x128xf32>
      %cst_45 = arith.constant 5.000000e-01 : f32
      %86 = vector.broadcast %cst_45 : f32 to vector<8x128xf32>
      %87 = arith.mulf %86, %85 : vector<8x128xf32>
      %cst_46 = arith.constant 0.707106769 : f32
      %88 = vector.broadcast %cst_46 : f32 to vector<8x128xf32>
      %89 = arith.mulf %85, %88 : vector<8x128xf32>
      %90 = math.erf %89 : vector<8x128xf32>
      %cst_47 = arith.constant 1.000000e+00 : f32
      %91 = vector.broadcast %cst_47 : f32 to vector<8x128xf32>
      %92 = arith.addf %91, %90 : vector<8x128xf32>
      %93 = arith.mulf %87, %92 : vector<8x128xf32>
      %94 = arith.truncf %93 : vector<8x128xf32> to vector<8x128xbf16>
      %c0_48 = arith.constant 0 : index
      %c0_49 = arith.constant 0 : index
      %95 = vector.load %arg12[%c0_48, %c0_49] : memref<128x32xbf16, #tpu.memory_space<vmem>>, vector<128x32xbf16>
      %cst_50 = arith.constant dense<0.000000e+00> : vector<8x32xf32>
      %96 = tpu.matmul %94, %95, %cst_50 {dimension_numbers = #tpu.dot_dimension_numbers<[1], [0], [0], [1], [0, 0, 1, 1], [], []>} : vector<8x128xbf16>, vector<128x32xbf16>, vector<8x32xf32> -> vector<8x32xf32>
      %97 = arith.addf %80, %96 : vector<8x32xf32>
      %98 = arith.truncf %97 : vector<8x32xf32> to vector<8x32xbf16>
      %c0_51 = arith.constant 0 : index
      %c0_52 = arith.constant 0 : index
      %c0_53 = arith.constant 0 : index
      %99 = vector.load %arg14[%c0_51, %c0_52, %c0_53] : memref<1x8x32xbf16, #tpu.memory_space<vmem>>, vector<1x8x32xbf16>
      %100 = vector.shape_cast %99 : vector<1x8x32xbf16> to vector<8x32xbf16>
      %101 = vector.shape_cast %98 : vector<8x32xbf16> to vector<1x8x32xbf16>
      tpu.vector_store %arg14[%c0_51, %c0_52, %c0_53], %101 {strides = array<i32>} : memref<1x8x32xbf16, #tpu.memory_space<vmem>>, vector<1x8x32xbf16>,
    } else {
    }
    return
  }
  func.func @transform_0(%arg0: i32, %arg1: i32) -> (i32, i32, i32) {
    %c0_i32 = arith.constant 0 : i32
    %c0_i32_0 = arith.constant 0 : i32
    %c0_i32_1 = arith.constant 0 : i32
    return %arg0, %c0_i32, %c0_i32_0 : i32, i32, i32
  }
  func.func @transform_1(%arg0: i32, %arg1: i32) -> (i32, i32) {
    %c0_i32 = arith.constant 0 : i32
    %c0_i32_0 = arith.constant 0 : i32
    %c0_i32_1 = arith.constant 0 : i32
    return %c0_i32, %c0_i32_0 : i32, i32
  }
  func.func @transform_2(%arg0: i32, %arg1: i32) -> (i32, i32) {
    %c0_i32 = arith.constant 0 : i32
    %c0_i32_0 = arith.constant 0 : i32
    %c0_i32_1 = arith.constant 0 : i32
    return %c0_i32, %c0_i32_0 : i32, i32
  }
  func.func @transform_3(%arg0: i32, %arg1: i32) -> (i32, i32) {
    %c0_i32 = arith.constant 0 : i32
    %c0_i32_0 = arith.constant 0 : i32
    %c0_i32_1 = arith.constant 0 : i32
    return %c0_i32, %c0_i32_0 : i32, i32
  }
  func.func @transform_4(%arg0: i32, %arg1: i32) -> (i32, i32) {
    %c0_i32 = arith.constant 0 : i32
    %c0_i32_0 = arith.constant 0 : i32
    %c0_i32_1 = arith.constant 0 : i32
    return %c0_i32, %c0_i32_0 : i32, i32
  }
  func.func @transform_5(%arg0: i32, %arg1: i32) -> (i32, i32) {
    %c0_i32 = arith.constant 0 : i32
    %c0_i32_0 = arith.constant 0 : i32
    %c0_i32_1 = arith.constant 0 : i32
    return %c0_i32, %c0_i32_0 : i32, i32
  }
  func.func @transform_6(%arg0: i32, %arg1: i32) -> (i32, i32) {
    %c0_i32 = arith.constant 0 : i32
    %c0_i32_0 = arith.constant 0 : i32
    %c0_i32_1 = arith.constant 0 : i32
    return %c0_i32, %c0_i32_0 : i32, i32
  }
  func.func @transform_7(%arg0: i32, %arg1: i32) -> (i32, i32) {
    %c0_i32 = arith.constant 0 : i32
    %c0_i32_0 = arith.constant 0 : i32
    %c0_i32_1 = arith.constant 0 : i32
    return %c0_i32, %c0_i32_0 : i32, i32
  }
  func.func @transform_8(%arg0: i32, %arg1: i32) -> (i32, i32) {
    %c0_i32 = arith.constant 0 : i32
    %c0_i32_0 = arith.constant 0 : i32
    %c0_i32_1 = arith.constant 0 : i32
    return %c0_i32, %c0_i32_0 : i32, i32
  }
  func.func @transform_9(%arg0: i32, %arg1: i32) -> (i32, i32) {
    %c0_i32 = arith.constant 0 : i32
    %c0_i32_0 = arith.constant 0 : i32
    %c0_i32_1 = arith.constant 0 : i32
    return %c0_i32, %c0_i32_0 : i32, i32
  }
  func.func @transform_10(%arg0: i32, %arg1: i32) -> (i32, i32) {
    %c0_i32 = arith.constant 0 : i32
    %c0_i32_0 = arith.constant 0 : i32
    %c0_i32_1 = arith.constant 0 : i32
    return %c0_i32, %c0_i32_0 : i32, i32
  }
  func.func @transform_11(%arg0: i32, %arg1: i32) -> (i32, i32) {
    %c0_i32 = arith.constant 0 : i32
    %c0_i32_0 = arith.constant 0 : i32
    %c0_i32_1 = arith.constant 0 : i32
    return %c0_i32, %c0_i32_0 : i32, i32
  }
  func.func @transform_12(%arg0: i32, %arg1: i32) -> (i32, i32, i32) {
    %c0_i32 = arith.constant 0 : i32
    %c0_i32_0 = arith.constant 0 : i32
    %c0_i32_1 = arith.constant 0 : i32
    return %arg0, %c0_i32, %c0_i32_0 : i32, i32, i32
  }
}

module attributes {stable_mosaic.version = 11 : i64} {
  func.func @_block_kernel(%arg0: i32, %arg1: i32, %arg2: memref<1x8x32xbf16, #tpu.memory_space<vmem>>, %arg3: memref<1x32xf32, #tpu.memory_space<vmem>>, %arg4: memref<1x32xf32, #tpu.memory_space<vmem>>, %arg5: memref<32x96xbf16, #tpu.memory_space<vmem>>, %arg6: memref<32x32xbf16, #tpu.memory_space<vmem>>, %arg7: memref<1x32xf32, #tpu.memory_space<vmem>>, %arg8: memref<1x32xf32, #tpu.memory_space<vmem>>, %arg9: memref<1x32xf32, #tpu.memory_space<vmem>>, %arg10: memref<32x128xbf16, #tpu.memory_space<vmem>>, %arg11: memref<1x128xf32, #tpu.memory_space<vmem>>, %arg12: memref<128x32xbf16, #tpu.memory_space<vmem>>, %arg13: memref<1x32xf32, #tpu.memory_space<vmem>>, %arg14: memref<1x8x32xbf16, #tpu.memory_space<vmem>>, %arg15: memref<12x8x8xbf16, #tpu.memory_space<vmem>>, %arg16: memref<4x8x8xbf16, #tpu.memory_space<vmem>>) attributes {dimension_semantics = [#tpu.dimension_semantics<parallel>, #tpu.dimension_semantics<arbitrary>], iteration_bounds = array<i64: 2, 4>, scalar_prefetch = 0 : i64, scratch_operands = 2 : i64, tpu.core_type = #tpu.core_type<tc>, window_params = [{transform_indices = @transform_0, window_bounds = array<i64: 1, 8, 32>}, {pipeline_mode = #tpu.pipeline_mode<synchronous>, transform_indices = @transform_1, window_bounds = array<i64: 1, 32>}, {pipeline_mode = #tpu.pipeline_mode<synchronous>, transform_indices = @transform_2, window_bounds = array<i64: 1, 32>}, {pipeline_mode = #tpu.pipeline_mode<synchronous>, transform_indices = @transform_3, window_bounds = array<i64: 32, 96>}, {pipeline_mode = #tpu.pipeline_mode<synchronous>, transform_indices = @transform_4, window_bounds = array<i64: 32, 32>}, {pipeline_mode = #tpu.pipeline_mode<synchronous>, transform_indices = @transform_5, window_bounds = array<i64: 1, 32>}, {pipeline_mode = #tpu.pipeline_mode<synchronous>, transform_indices = @transform_6, window_bounds = array<i64: 1, 32>}, {pipeline_mode = #tpu.pipeline_mode<synchronous>, transform_indices = @transform_7, window_bounds = array<i64: 1, 32>}, {pipeline_mode = #tpu.pipeline_mode<synchronous>, transform_indices = @transform_8, window_bounds = array<i64: 32, 128>}, {pipeline_mode = #tpu.pipeline_mode<synchronous>, transform_indices = @transform_9, window_bounds = array<i64: 1, 128>}, {pipeline_mode = #tpu.pipeline_mode<synchronous>, transform_indices = @transform_10, window_bounds = array<i64: 128, 32>}, {pipeline_mode = #tpu.pipeline_mode<synchronous>, transform_indices = @transform_11, window_bounds = array<i64: 1, 32>}, {transform_indices = @transform_12, window_bounds = array<i64: 1, 8, 32>}]} {
    %c0_i32 = arith.constant 0 : i32
    %0 = arith.cmpi eq, %arg1, %c0_i32 : i32
    %1 = arith.extui %0 : i1 to i32
    %c0_i32_0 = arith.constant 0 : i32
    %2 = arith.cmpi ne, %1, %c0_i32_0 : i32
    scf.if %2 {
      %c0_12 = arith.constant 0 : index
      %c0_13 = arith.constant 0 : index
      %c0_14 = arith.constant 0 : index
      %35 = vector.load %arg2[%c0_12, %c0_13, %c0_14] : memref<1x8x32xbf16, #tpu.memory_space<vmem>>, vector<1x8x32xbf16>
      %36 = vector.shape_cast %35 : vector<1x8x32xbf16> to vector<8x32xbf16>
      %37 = arith.extf %36 : vector<8x32xbf16> to vector<8x32xf32>
      %c0_15 = arith.constant 0 : index
      %c0_16 = arith.constant 0 : index
      %38 = vector.load %arg3[%c0_15, %c0_16] : memref<1x32xf32, #tpu.memory_space<vmem>>, vector<1x32xf32>
      %c0_17 = arith.constant 0 : index
      %c0_18 = arith.constant 0 : index
      %39 = vector.load %arg4[%c0_17, %c0_18] : memref<1x32xf32, #tpu.memory_space<vmem>>, vector<1x32xf32>
      %cst_19 = arith.constant dense<0.000000e+00> : vector<8xf32>
      %40 = vector.multi_reduction <add>, %37, %cst_19 [1] : vector<8x32xf32> to vector<8xf32>
      %41 = vector.shape_cast %40 : vector<8xf32> to vector<8x1xf32>
      %cst_20 = arith.constant 3.200000e+01 : f32
      %42 = vector.broadcast %cst_20 : f32 to vector<8x1xf32>
      %43 = arith.divf %41, %42 : vector<8x1xf32>
      %44 = vector.broadcast %43 : vector<8x1xf32> to vector<8x32xf32>
      %45 = arith.subf %37, %44 : vector<8x32xf32>
      %46 = arith.mulf %45, %45 : vector<8x32xf32>
      %cst_21 = arith.constant dense<0.000000e+00> : vector<8xf32>
      %47 = vector.multi_reduction <add>, %46, %cst_21 [1] : vector<8x32xf32> to vector<8xf32>
      %48 = vector.shape_cast %47 : vector<8xf32> to vector<8x1xf32>
      %cst_22 = arith.constant 3.200000e+01 : f32
      %49 = vector.broadcast %cst_22 : f32 to vector<8x1xf32>
      %50 = arith.divf %48, %49 : vector<8x1xf32>
      %51 = vector.broadcast %43 : vector<8x1xf32> to vector<8x32xf32>
      %52 = arith.subf %37, %51 : vector<8x32xf32>
      %cst_23 = arith.constant 9.99999974E-6 : f32
      %53 = vector.broadcast %cst_23 : f32 to vector<8x1xf32>
      %54 = arith.addf %50, %53 : vector<8x1xf32>
      %55 = math.rsqrt %54 : vector<8x1xf32>
      %56 = vector.broadcast %55 : vector<8x1xf32> to vector<8x32xf32>
      %57 = arith.mulf %52, %56 : vector<8x32xf32>
      %58 = vector.broadcast %38 : vector<1x32xf32> to vector<8x32xf32>
      %59 = arith.mulf %57, %58 : vector<8x32xf32>
      %60 = vector.broadcast %39 : vector<1x32xf32> to vector<8x32xf32>
      %61 = arith.addf %59, %60 : vector<8x32xf32>
      %62 = arith.truncf %61 : vector<8x32xf32> to vector<8x32xbf16>
      %c0_24 = arith.constant 0 : index
      %c0_25 = arith.constant 0 : index
      %63 = vector.load %arg5[%c0_24, %c0_25] : memref<32x96xbf16, #tpu.memory_space<vmem>>, vector<32x96xbf16>
      %cst_26 = arith.constant dense<0.000000e+00> : vector<8x96xf32>
      %64 = tpu.matmul %62, %63, %cst_26 {dimension_numbers = #tpu.dot_dimension_numbers<[1], [0], [0], [1], [0, 0, 1, 1], [], []>} : vector<8x32xbf16>, vector<32x96xbf16>, vector<8x96xf32> -> vector<8x96xf32>
      %65 = vector.extract_strided_slice %64 {offsets = [0, 0], sizes = [8, 8], strides = [1, 1]} : vector<8x96xf32> to vector<8x8xf32>
      %cst_27 = arith.constant 0.353553385 : f32
      %66 = vector.broadcast %cst_27 : f32 to vector<8x8xf32>
      %67 = arith.mulf %65, %66 : vector<8x8xf32>
      %68 = arith.truncf %67 : vector<8x8xf32> to vector<8x8xbf16>
      %c0_28 = arith.constant 0 : index
      %c0_29 = arith.constant 0 : index
      %c0_30 = arith.constant 0 : index
      %69 = vector.load %arg15[%c0_28, %c0_29, %c0_30] : memref<12x8x8xbf16, #tpu.memory_space<vmem>>, vector<1x8x8xbf16>
      %70 = vector.shape_cast %69 : vector<1x8x8xbf16> to vector<8x8xbf16>
      %71 = vector.shape_cast %68 : vector<8x8xbf16> to vector<1x8x8xbf16>
      tpu.vector_store %arg15[%c0_28, %c0_29, %c0_30], %71 {strides = array<i32>} : memref<12x8x8xbf16, #tpu.memory_space<vmem>>, vector<1x8x8xbf16>,
      %72 = vector.extract_strided_slice %64 {offsets = [0, 32], sizes = [8, 8], strides = [1, 1]} : vector<8x96xf32> to vector<8x8xf32>
      %73 = arith.truncf %72 : vector<8x8xf32> to vector<8x8xbf16>
      %c4 = arith.constant 4 : index
      %c0_31 = arith.constant 0 : index
      %c0_32 = arith.constant 0 : index
      %74 = vector.load %arg15[%c4, %c0_31, %c0_32] : memref<12x8x8xbf16, #tpu.memory_space<vmem>>, vector<1x8x8xbf16>
      %75 = vector.shape_cast %74 : vector<1x8x8xbf16> to vector<8x8xbf16>
      %76 = vector.shape_cast %73 : vector<8x8xbf16> to vector<1x8x8xbf16>
      tpu.vector_store %arg15[%c4, %c0_31, %c0_32], %76 {strides = array<i32>} : memref<12x8x8xbf16, #tpu.memory_space<vmem>>, vector<1x8x8xbf16>,
      %77 = vector.extract_strided_slice %64 {offsets = [0, 64], sizes = [8, 8], strides = [1, 1]} : vector<8x96xf32> to vector<8x8xf32>
      %78 = arith.truncf %77 : vector<8x8xf32> to vector<8x8xbf16>
      %c8 = arith.constant 8 : index
      %c0_33 = arith.constant 0 : index
      %c0_34 = arith.constant 0 : index
      %79 = vector.load %arg15[%c8, %c0_33, %c0_34] : memref<12x8x8xbf16, #tpu.memory_space<vmem>>, vector<1x8x8xbf16>
      %80 = vector.shape_cast %79 : vector<1x8x8xbf16> to vector<8x8xbf16>
      %81 = vector.shape_cast %78 : vector<8x8xbf16> to vector<1x8x8xbf16>
      tpu.vector_store %arg15[%c8, %c0_33, %c0_34], %81 {strides = array<i32>} : memref<12x8x8xbf16, #tpu.memory_space<vmem>>, vector<1x8x8xbf16>,
      %82 = vector.extract_strided_slice %64 {offsets = [0, 8], sizes = [8, 8], strides = [1, 1]} : vector<8x96xf32> to vector<8x8xf32>
      %cst_35 = arith.constant 0.353553385 : f32
      %83 = vector.broadcast %cst_35 : f32 to vector<8x8xf32>
      %84 = arith.mulf %82, %83 : vector<8x8xf32>
      %85 = arith.truncf %84 : vector<8x8xf32> to vector<8x8xbf16>
      %c1 = arith.constant 1 : index
      %c0_36 = arith.constant 0 : index
      %c0_37 = arith.constant 0 : index
      %86 = vector.load %arg15[%c1, %c0_36, %c0_37] : memref<12x8x8xbf16, #tpu.memory_space<vmem>>, vector<1x8x8xbf16>
      %87 = vector.shape_cast %86 : vector<1x8x8xbf16> to vector<8x8xbf16>
      %88 = vector.shape_cast %85 : vector<8x8xbf16> to vector<1x8x8xbf16>
      tpu.vector_store %arg15[%c1, %c0_36, %c0_37], %88 {strides = array<i32>} : memref<12x8x8xbf16, #tpu.memory_space<vmem>>, vector<1x8x8xbf16>,
      %89 = vector.extract_strided_slice %64 {offsets = [0, 40], sizes = [8, 8], strides = [1, 1]} : vector<8x96xf32> to vector<8x8xf32>
      %90 = arith.truncf %89 : vector<8x8xf32> to vector<8x8xbf16>
      %c5 = arith.constant 5 : index
      %c0_38 = arith.constant 0 : index
      %c0_39 = arith.constant 0 : index
      %91 = vector.load %arg15[%c5, %c0_38, %c0_39] : memref<12x8x8xbf16, #tpu.memory_space<vmem>>, vector<1x8x8xbf16>
      %92 = vector.shape_cast %91 : vector<1x8x8xbf16> to vector<8x8xbf16>
      %93 = vector.shape_cast %90 : vector<8x8xbf16> to vector<1x8x8xbf16>
      tpu.vector_store %arg15[%c5, %c0_38, %c0_39], %93 {strides = array<i32>} : memref<12x8x8xbf16, #tpu.memory_space<vmem>>, vector<1x8x8xbf16>,
      %94 = vector.extract_strided_slice %64 {offsets = [0, 72], sizes = [8, 8], strides = [1, 1]} : vector<8x96xf32> to vector<8x8xf32>
      %95 = arith.truncf %94 : vector<8x8xf32> to vector<8x8xbf16>
      %c9 = arith.constant 9 : index
      %c0_40 = arith.constant 0 : index
      %c0_41 = arith.constant 0 : index
      %96 = vector.load %arg15[%c9, %c0_40, %c0_41] : memref<12x8x8xbf16, #tpu.memory_space<vmem>>, vector<1x8x8xbf16>
      %97 = vector.shape_cast %96 : vector<1x8x8xbf16> to vector<8x8xbf16>
      %98 = vector.shape_cast %95 : vector<8x8xbf16> to vector<1x8x8xbf16>
      tpu.vector_store %arg15[%c9, %c0_40, %c0_41], %98 {strides = array<i32>} : memref<12x8x8xbf16, #tpu.memory_space<vmem>>, vector<1x8x8xbf16>,
      %99 = vector.extract_strided_slice %64 {offsets = [0, 16], sizes = [8, 8], strides = [1, 1]} : vector<8x96xf32> to vector<8x8xf32>
      %cst_42 = arith.constant 0.353553385 : f32
      %100 = vector.broadcast %cst_42 : f32 to vector<8x8xf32>
      %101 = arith.mulf %99, %100 : vector<8x8xf32>
      %102 = arith.truncf %101 : vector<8x8xf32> to vector<8x8xbf16>
      %c2 = arith.constant 2 : index
      %c0_43 = arith.constant 0 : index
      %c0_44 = arith.constant 0 : index
      %103 = vector.load %arg15[%c2, %c0_43, %c0_44] : memref<12x8x8xbf16, #tpu.memory_space<vmem>>, vector<1x8x8xbf16>
      %104 = vector.shape_cast %103 : vector<1x8x8xbf16> to vector<8x8xbf16>
      %105 = vector.shape_cast %102 : vector<8x8xbf16> to vector<1x8x8xbf16>
      tpu.vector_store %arg15[%c2, %c0_43, %c0_44], %105 {strides = array<i32>} : memref<12x8x8xbf16, #tpu.memory_space<vmem>>, vector<1x8x8xbf16>,
      %106 = vector.extract_strided_slice %64 {offsets = [0, 48], sizes = [8, 8], strides = [1, 1]} : vector<8x96xf32> to vector<8x8xf32>
      %107 = arith.truncf %106 : vector<8x8xf32> to vector<8x8xbf16>
      %c6 = arith.constant 6 : index
      %c0_45 = arith.constant 0 : index
      %c0_46 = arith.constant 0 : index
      %108 = vector.load %arg15[%c6, %c0_45, %c0_46] : memref<12x8x8xbf16, #tpu.memory_space<vmem>>, vector<1x8x8xbf16>
      %109 = vector.shape_cast %108 : vector<1x8x8xbf16> to vector<8x8xbf16>
      %110 = vector.shape_cast %107 : vector<8x8xbf16> to vector<1x8x8xbf16>
      tpu.vector_store %arg15[%c6, %c0_45, %c0_46], %110 {strides = array<i32>} : memref<12x8x8xbf16, #tpu.memory_space<vmem>>, vector<1x8x8xbf16>,
      %111 = vector.extract_strided_slice %64 {offsets = [0, 80], sizes = [8, 8], strides = [1, 1]} : vector<8x96xf32> to vector<8x8xf32>
      %112 = arith.truncf %111 : vector<8x8xf32> to vector<8x8xbf16>
      %c10 = arith.constant 10 : index
      %c0_47 = arith.constant 0 : index
      %c0_48 = arith.constant 0 : index
      %113 = vector.load %arg15[%c10, %c0_47, %c0_48] : memref<12x8x8xbf16, #tpu.memory_space<vmem>>, vector<1x8x8xbf16>
      %114 = vector.shape_cast %113 : vector<1x8x8xbf16> to vector<8x8xbf16>
      %115 = vector.shape_cast %112 : vector<8x8xbf16> to vector<1x8x8xbf16>
      tpu.vector_store %arg15[%c10, %c0_47, %c0_48], %115 {strides = array<i32>} : memref<12x8x8xbf16, #tpu.memory_space<vmem>>, vector<1x8x8xbf16>,
      %116 = vector.extract_strided_slice %64 {offsets = [0, 24], sizes = [8, 8], strides = [1, 1]} : vector<8x96xf32> to vector<8x8xf32>
      %cst_49 = arith.constant 0.353553385 : f32
      %117 = vector.broadcast %cst_49 : f32 to vector<8x8xf32>
      %118 = arith.mulf %116, %117 : vector<8x8xf32>
      %119 = arith.truncf %118 : vector<8x8xf32> to vector<8x8xbf16>
      %c3 = arith.constant 3 : index
      %c0_50 = arith.constant 0 : index
      %c0_51 = arith.constant 0 : index
      %120 = vector.load %arg15[%c3, %c0_50, %c0_51] : memref<12x8x8xbf16, #tpu.memory_space<vmem>>, vector<1x8x8xbf16>
      %121 = vector.shape_cast %120 : vector<1x8x8xbf16> to vector<8x8xbf16>
      %122 = vector.shape_cast %119 : vector<8x8xbf16> to vector<1x8x8xbf16>
      tpu.vector_store %arg15[%c3, %c0_50, %c0_51], %122 {strides = array<i32>} : memref<12x8x8xbf16, #tpu.memory_space<vmem>>, vector<1x8x8xbf16>,
      %123 = vector.extract_strided_slice %64 {offsets = [0, 56], sizes = [8, 8], strides = [1, 1]} : vector<8x96xf32> to vector<8x8xf32>
      %124 = arith.truncf %123 : vector<8x8xf32> to vector<8x8xbf16>
      %c7 = arith.constant 7 : index
      %c0_52 = arith.constant 0 : index
      %c0_53 = arith.constant 0 : index
      %125 = vector.load %arg15[%c7, %c0_52, %c0_53] : memref<12x8x8xbf16, #tpu.memory_space<vmem>>, vector<1x8x8xbf16>
      %126 = vector.shape_cast %125 : vector<1x8x8xbf16> to vector<8x8xbf16>
      %127 = vector.shape_cast %124 : vector<8x8xbf16> to vector<1x8x8xbf16>
      tpu.vector_store %arg15[%c7, %c0_52, %c0_53], %127 {strides = array<i32>} : memref<12x8x8xbf16, #tpu.memory_space<vmem>>, vector<1x8x8xbf16>,
      %128 = vector.extract_strided_slice %64 {offsets = [0, 88], sizes = [8, 8], strides = [1, 1]} : vector<8x96xf32> to vector<8x8xf32>
      %129 = arith.truncf %128 : vector<8x8xf32> to vector<8x8xbf16>
      %c11 = arith.constant 11 : index
      %c0_54 = arith.constant 0 : index
      %c0_55 = arith.constant 0 : index
      %130 = vector.load %arg15[%c11, %c0_54, %c0_55] : memref<12x8x8xbf16, #tpu.memory_space<vmem>>, vector<1x8x8xbf16>
      %131 = vector.shape_cast %130 : vector<1x8x8xbf16> to vector<8x8xbf16>
      %132 = vector.shape_cast %129 : vector<8x8xbf16> to vector<1x8x8xbf16>
      tpu.vector_store %arg15[%c11, %c0_54, %c0_55], %132 {strides = array<i32>} : memref<12x8x8xbf16, #tpu.memory_space<vmem>>, vector<1x8x8xbf16>,
    } else {
    }
    %3 = arith.index_cast %arg1 : i32 to index
    %c0 = arith.constant 0 : index
    %c0_1 = arith.constant 0 : index
    %4 = vector.load %arg15[%3, %c0, %c0_1] : memref<12x8x8xbf16, #tpu.memory_space<vmem>>, vector<1x8x8xbf16>
    %5 = vector.shape_cast %4 : vector<1x8x8xbf16> to vector<8x8xbf16>
    %c4_i32 = arith.constant 4 : i32
    %6 = arith.addi %c4_i32, %arg1 : i32
    %7 = arith.index_cast %6 : i32 to index
    %c0_2 = arith.constant 0 : index
    %c0_3 = arith.constant 0 : index
    %8 = vector.load %arg15[%7, %c0_2, %c0_3] : memref<12x8x8xbf16, #tpu.memory_space<vmem>>, vector<1x8x8xbf16>
    %9 = vector.shape_cast %8 : vector<1x8x8xbf16> to vector<8x8xbf16>
    %c8_i32 = arith.constant 8 : i32
    %10 = arith.addi %c8_i32, %arg1 : i32
    %11 = arith.index_cast %10 : i32 to index
    %c0_4 = arith.constant 0 : index
    %c0_5 = arith.constant 0 : index
    %12 = vector.load %arg15[%11, %c0_4, %c0_5] : memref<12x8x8xbf16, #tpu.memory_space<vmem>>, vector<1x8x8xbf16>
    %13 = vector.shape_cast %12 : vector<1x8x8xbf16> to vector<8x8xbf16>
    %cst = arith.constant dense<0.000000e+00> : vector<8x8xf32>
    %14 = tpu.matmul %5, %9, %cst {dimension_numbers = #tpu.dot_dimension_numbers<[1], [1], [0], [0], [0, 0, 1, 0], [], []>} : vector<8x8xbf16>, vector<8x8xbf16>, vector<8x8xf32> -> vector<8x8xf32>
    %cst_6 = arith.constant dense<0xFF800000> : vector<8xf32>
    %15 = vector.multi_reduction <maximumf>, %14, %cst_6 [1] : vector<8x8xf32> to vector<8xf32>
    %16 = vector.shape_cast %15 : vector<8xf32> to vector<8x1xf32>
    %17 = vector.broadcast %16 : vector<8x1xf32> to vector<8x8xf32>
    %18 = arith.subf %14, %17 : vector<8x8xf32>
    %19 = math.exp %18 : vector<8x8xf32>
    %cst_7 = arith.constant dense<0.000000e+00> : vector<8xf32>
    %20 = vector.multi_reduction <add>, %19, %cst_7 [1] : vector<8x8xf32> to vector<8xf32>
    %21 = vector.shape_cast %20 : vector<8xf32> to vector<8x1xf32>
    %22 = tpu.reciprocal %21 {approx = true} : vector<8x1xf32> -> vector<8x1xf32>
    %23 = arith.truncf %19 : vector<8x8xf32> to vector<8x8xbf16>
    %cst_8 = arith.constant dense<0.000000e+00> : vector<8x8xf32>
    %24 = tpu.matmul %23, %13, %cst_8 {dimension_numbers = #tpu.dot_dimension_numbers<[1], [0], [0], [1], [0, 0, 1, 1], [], []>} : vector<8x8xbf16>, vector<8x8xbf16>, vector<8x8xf32> -> vector<8x8xf32>
    %25 = vector.broadcast %22 : vector<8x1xf32> to vector<8x8xf32>
    %26 = arith.mulf %24, %25 : vector<8x8xf32>
    %27 = arith.truncf %26 : vector<8x8xf32> to vector<8x8xbf16>
    %28 = arith.index_cast %arg1 : i32 to index
    %c0_9 = arith.constant 0 : index
    %c0_10 = arith.constant 0 : index
    %29 = vector.load %arg16[%28, %c0_9, %c0_10] : memref<4x8x8xbf16, #tpu.memory_space<vmem>>, vector<1x8x8xbf16>
    %30 = vector.shape_cast %29 : vector<1x8x8xbf16> to vector<8x8xbf16>
    %31 = vector.shape_cast %27 : vector<8x8xbf16> to vector<1x8x8xbf16>
    tpu.vector_store %arg16[%28, %c0_9, %c0_10], %31 {strides = array<i32>} : memref<4x8x8xbf16, #tpu.memory_space<vmem>>, vector<1x8x8xbf16>,
    %c3_i32 = arith.constant 3 : i32
    %32 = arith.cmpi eq, %arg1, %c3_i32 : i32
    %33 = arith.extui %32 : i1 to i32
    %c0_i32_11 = arith.constant 0 : i32
    %34 = arith.cmpi ne, %33, %c0_i32_11 : i32
    scf.if %34 {
      %c0_12 = arith.constant 0 : index
      %c0_13 = arith.constant 0 : index
      %c0_14 = arith.constant 0 : index
      %35 = vector.load %arg2[%c0_12, %c0_13, %c0_14] : memref<1x8x32xbf16, #tpu.memory_space<vmem>>, vector<1x8x32xbf16>
      %36 = vector.shape_cast %35 : vector<1x8x32xbf16> to vector<8x32xbf16>
      %37 = arith.extf %36 : vector<8x32xbf16> to vector<8x32xf32>
      %c0_15 = arith.constant 0 : index
      %c0_16 = arith.constant 0 : index
      %c0_17 = arith.constant 0 : index
      %38 = vector.load %arg16[%c0_15, %c0_16, %c0_17] : memref<4x8x8xbf16, #tpu.memory_space<vmem>>, vector<1x8x8xbf16>
      %39 = vector.shape_cast %38 : vector<1x8x8xbf16> to vector<8x8xbf16>
      %c1 = arith.constant 1 : index
      %c0_18 = arith.constant 0 : index
      %c0_19 = arith.constant 0 : index
      %40 = vector.load %arg16[%c1, %c0_18, %c0_19] : memref<4x8x8xbf16, #tpu.memory_space<vmem>>, vector<1x8x8xbf16>
      %41 = vector.shape_cast %40 : vector<1x8x8xbf16> to vector<8x8xbf16>
      %c2 = arith.constant 2 : index
      %c0_20 = arith.constant 0 : index
      %c0_21 = arith.constant 0 : index
      %42 = vector.load %arg16[%c2, %c0_20, %c0_21] : memref<4x8x8xbf16, #tpu.memory_space<vmem>>, vector<1x8x8xbf16>
      %43 = vector.shape_cast %42 : vector<1x8x8xbf16> to vector<8x8xbf16>
      %c3 = arith.constant 3 : index
      %c0_22 = arith.constant 0 : index
      %c0_23 = arith.constant 0 : index
      %44 = vector.load %arg16[%c3, %c0_22, %c0_23] : memref<4x8x8xbf16, #tpu.memory_space<vmem>>, vector<1x8x8xbf16>
      %45 = vector.shape_cast %44 : vector<1x8x8xbf16> to vector<8x8xbf16>
      %46 = tpu.concatenate %39, %41, %43, %45 in 1 : vector<8x8xbf16>, vector<8x8xbf16>, vector<8x8xbf16>, vector<8x8xbf16> -> vector<8x32xbf16>
      %c0_24 = arith.constant 0 : index
      %c0_25 = arith.constant 0 : index
      %47 = vector.load %arg6[%c0_24, %c0_25] : memref<32x32xbf16, #tpu.memory_space<vmem>>, vector<32x32xbf16>
      %cst_26 = arith.constant dense<0.000000e+00> : vector<8x32xf32>
      %48 = tpu.matmul %46, %47, %cst_26 {dimension_numbers = #tpu.dot_dimension_numbers<[1], [0], [0], [1], [0, 0, 1, 1], [], []>} : vector<8x32xbf16>, vector<32x32xbf16>, vector<8x32xf32> -> vector<8x32xf32>
      %49 = arith.addf %37, %48 : vector<8x32xf32>
      %c0_27 = arith.constant 0 : index
      %c0_28 = arith.constant 0 : index
      %50 = vector.load %arg7[%c0_27, %c0_28] : memref<1x32xf32, #tpu.memory_space<vmem>>, vector<1x32xf32>
      %51 = vector.broadcast %50 : vector<1x32xf32> to vector<8x32xf32>
      %52 = arith.addf %49, %51 : vector<8x32xf32>
      %c0_29 = arith.constant 0 : index
      %c0_30 = arith.constant 0 : index
      %53 = vector.load %arg8[%c0_29, %c0_30] : memref<1x32xf32, #tpu.memory_space<vmem>>, vector<1x32xf32>
      %c0_31 = arith.constant 0 : index
      %c0_32 = arith.constant 0 : index
      %54 = vector.load %arg9[%c0_31, %c0_32] : memref<1x32xf32, #tpu.memory_space<vmem>>, vector<1x32xf32>
      %cst_33 = arith.constant dense<0.000000e+00> : vector<8xf32>
      %55 = vector.multi_reduction <add>, %52, %cst_33 [1] : vector<8x32xf32> to vector<8xf32>
      %56 = vector.shape_cast %55 : vector<8xf32> to vector<8x1xf32>
      %cst_34 = arith.constant 3.200000e+01 : f32
      %57 = vector.broadcast %cst_34 : f32 to vector<8x1xf32>
      %58 = arith.divf %56, %57 : vector<8x1xf32>
      %59 = vector.broadcast %58 : vector<8x1xf32> to vector<8x32xf32>
      %60 = arith.subf %52, %59 : vector<8x32xf32>
      %61 = arith.mulf %60, %60 : vector<8x32xf32>
      %cst_35 = arith.constant dense<0.000000e+00> : vector<8xf32>
      %62 = vector.multi_reduction <add>, %61, %cst_35 [1] : vector<8x32xf32> to vector<8xf32>
      %63 = vector.shape_cast %62 : vector<8xf32> to vector<8x1xf32>
      %cst_36 = arith.constant 3.200000e+01 : f32
      %64 = vector.broadcast %cst_36 : f32 to vector<8x1xf32>
      %65 = arith.divf %63, %64 : vector<8x1xf32>
      %66 = vector.broadcast %58 : vector<8x1xf32> to vector<8x32xf32>
      %67 = arith.subf %52, %66 : vector<8x32xf32>
      %cst_37 = arith.constant 9.99999974E-6 : f32
      %68 = vector.broadcast %cst_37 : f32 to vector<8x1xf32>
      %69 = arith.addf %65, %68 : vector<8x1xf32>
      %70 = math.rsqrt %69 : vector<8x1xf32>
      %71 = vector.broadcast %70 : vector<8x1xf32> to vector<8x32xf32>
      %72 = arith.mulf %67, %71 : vector<8x32xf32>
      %73 = vector.broadcast %53 : vector<1x32xf32> to vector<8x32xf32>
      %74 = arith.mulf %72, %73 : vector<8x32xf32>
      %75 = vector.broadcast %54 : vector<1x32xf32> to vector<8x32xf32>
      %76 = arith.addf %74, %75 : vector<8x32xf32>
      %77 = arith.truncf %76 : vector<8x32xf32> to vector<8x32xbf16>
      %c0_38 = arith.constant 0 : index
      %c0_39 = arith.constant 0 : index
      %78 = vector.load %arg13[%c0_38, %c0_39] : memref<1x32xf32, #tpu.memory_space<vmem>>, vector<1x32xf32>
      %79 = vector.broadcast %78 : vector<1x32xf32> to vector<8x32xf32>
      %80 = arith.addf %52, %79 : vector<8x32xf32>
      %c0_40 = arith.constant 0 : index
      %c0_41 = arith.constant 0 : index
      %81 = vector.load %arg10[%c0_40, %c0_41] : memref<32x128xbf16, #tpu.memory_space<vmem>>, vector<32x128xbf16>
      %cst_42 = arith.constant dense<0.000000e+00> : vector<8x128xf32>
      %82 = tpu.matmul %77, %81, %cst_42 {dimension_numbers = #tpu.dot_dimension_numbers<[1], [0], [0], [1], [0, 0, 1, 1], [], []>} : vector<8x32xbf16>, vector<32x128xbf16>, vector<8x128xf32> -> vector<8x128xf32>
      %c0_43 = arith.constant 0 : index
      %c0_44 = arith.constant 0 : index
      %83 = vector.load %arg11[%c0_43, %c0_44] : memref<1x128xf32, #tpu.memory_space<vmem>>, vector<1x128xf32>
      %84 = vector.broadcast %83 : vector<1x128xf32> to vector<8x128xf32>
      %85 = arith.addf %82, %84 : vector<8x128xf32>
      %cst_45 = arith.constant 5.000000e-01 : f32
      %86 = vector.broadcast %cst_45 : f32 to vector<8x128xf32>
      %87 = arith.mulf %86, %85 : vector<8x128xf32>
      %cst_46 = arith.constant 0.707106769 : f32
      %88 = vector.broadcast %cst_46 : f32 to vector<8x128xf32>
      %89 = arith.mulf %85, %88 : vector<8x128xf32>
      %90 = math.erf %89 : vector<8x128xf32>
      %cst_47 = arith.constant 1.000000e+00 : f32
      %91 = vector.broadcast %cst_47 : f32 to vector<8x128xf32>
      %92 = arith.addf %91, %90 : vector<8x128xf32>
      %93 = arith.mulf %87, %92 : vector<8x128xf32>
      %94 = arith.truncf %93 : vector<8x128xf32> to vector<8x128xbf16>
      %c0_48 = arith.constant 0 : index
      %c0_49 = arith.constant 0 : index
      %95 = vector.load %arg12[%c0_48, %c0_49] : memref<128x32xbf16, #tpu.memory_space<vmem>>, vector<128x32xbf16>
      %cst_50 = arith.constant dense<0.000000e+00> : vector<8x32xf32>
      %96 = tpu.matmul %94, %95, %cst_50 {dimension_numbers = #tpu.dot_dimension_numbers<[1], [0], [0], [1], [0, 0, 1, 1], [], []>} : vector<8x128xbf16>, vector<128x32xbf16>, vector<8x32xf32> -> vector<8x32xf32>
      %97 = arith.addf %80, %96 : vector<8x32xf32>
      %98 = arith.truncf %97 : vector<8x32xf32> to vector<8x32xbf16>
      %c0_51 = arith.constant 0 : index
      %c0_52 = arith.constant 0 : index
      %c0_53 = arith.constant 0 : index
      %99 = vector.load %arg14[%c0_51, %c0_52, %c0_53] : memref<1x8x32xbf16, #tpu.memory_space<vmem>>, vector<1x8x32xbf16>
      %100 = vector.shape_cast %99 : vector<1x8x32xbf16> to vector<8x32xbf16>
      %101 = vector.shape_cast %98 : vector<8x32xbf16> to vector<1x8x32xbf16>
      tpu.vector_store %arg14[%c0_51, %c0_52, %c0_53], %101 {strides = array<i32>} : memref<1x8x32xbf16, #tpu.memory_space<vmem>>, vector<1x8x32xbf16>,
    } else {
    }
    return
  }
  func.func @transform_0(%arg0: i32, %arg1: i32) -> (i32, i32, i32) {
    %c0_i32 = arith.constant 0 : i32
    %c0_i32_0 = arith.constant 0 : i32
    %c0_i32_1 = arith.constant 0 : i32
    return %arg0, %c0_i32, %c0_i32_0 : i32, i32, i32
  }
  func.func @transform_1(%arg0: i32, %arg1: i32) -> (i32, i32) {
    %c0_i32 = arith.constant 0 : i32
    %c0_i32_0 = arith.constant 0 : i32
    %c0_i32_1 = arith.constant 0 : i32
    return %c0_i32, %c0_i32_0 : i32, i32
  }
  func.func @transform_2(%arg0: i32, %arg1: i32) -> (i32, i32) {
    %c0_i32 = arith.constant 0 : i32
    %c0_i32_0 = arith.constant 0 : i32
    %c0_i32_1 = arith.constant 0 : i32
    return %c0_i32, %c0_i32_0 : i32, i32
  }
  func.func @transform_3(%arg0: i32, %arg1: i32) -> (i32, i32) {
    %c0_i32 = arith.constant 0 : i32
    %c0_i32_0 = arith.constant 0 : i32
    %c0_i32_1 = arith.constant 0 : i32
    return %c0_i32, %c0_i32_0 : i32, i32
  }
  func.func @transform_4(%arg0: i32, %arg1: i32) -> (i32, i32) {
    %c0_i32 = arith.constant 0 : i32
    %c0_i32_0 = arith.constant 0 : i32
    %c0_i32_1 = arith.constant 0 : i32
    return %c0_i32, %c0_i32_0 : i32, i32
  }
  func.func @transform_5(%arg0: i32, %arg1: i32) -> (i32, i32) {
    %c0_i32 = arith.constant 0 : i32
    %c0_i32_0 = arith.constant 0 : i32
    %c0_i32_1 = arith.constant 0 : i32
    return %c0_i32, %c0_i32_0 : i32, i32
  }
  func.func @transform_6(%arg0: i32, %arg1: i32) -> (i32, i32) {
    %c0_i32 = arith.constant 0 : i32
    %c0_i32_0 = arith.constant 0 : i32
    %c0_i32_1 = arith.constant 0 : i32
    return %c0_i32, %c0_i32_0 : i32, i32
  }
  func.func @transform_7(%arg0: i32, %arg1: i32) -> (i32, i32) {
    %c0_i32 = arith.constant 0 : i32
    %c0_i32_0 = arith.constant 0 : i32
    %c0_i32_1 = arith.constant 0 : i32
    return %c0_i32, %c0_i32_0 : i32, i32
  }
  func.func @transform_8(%arg0: i32, %arg1: i32) -> (i32, i32) {
    %c0_i32 = arith.constant 0 : i32
    %c0_i32_0 = arith.constant 0 : i32
    %c0_i32_1 = arith.constant 0 : i32
    return %c0_i32, %c0_i32_0 : i32, i32
  }
  func.func @transform_9(%arg0: i32, %arg1: i32) -> (i32, i32) {
    %c0_i32 = arith.constant 0 : i32
    %c0_i32_0 = arith.constant 0 : i32
    %c0_i32_1 = arith.constant 0 : i32
    return %c0_i32, %c0_i32_0 : i32, i32
  }
  func.func @transform_10(%arg0: i32, %arg1: i32) -> (i32, i32) {
    %c0_i32 = arith.constant 0 : i32
    %c0_i32_0 = arith.constant 0 : i32
    %c0_i32_1 = arith.constant 0 : i32
    return %c0_i32, %c0_i32_0 : i32, i32
  }
  func.func @transform_11(%arg0: i32, %arg1: i32) -> (i32, i32) {
    %c0_i32 = arith.constant 0 : i32
    %c0_i32_0 = arith.constant 0 : i32
    %c0_i32_1 = arith.constant 0 : i32
    return %c0_i32, %c0_i32_0 : i32, i32
  }
  func.func @transform_12(%arg0: i32, %arg1: i32) -> (i32, i32, i32) {
    %c0_i32 = arith.constant 0 : i32
    %c0_i32_0 = arith.constant 0 : i32
    %c0_i32_1 = arith.constant 0 : i32
    return %arg0, %c0_i32, %c0_i32_0 : i32, i32, i32
  }
}

</mosaic_0001>

<bundles_post_ra>
// kernel: tpu_custom_call.1
= control target key start
LH: loop header
LB: loop body
LE: loop exit
PB: predicated region body
PF: predicated region fallthrough
CT: control target
= control target key end

     0   :  { %s1805_s0 = inlined_call_operand.vmem [shape: bf16[2,8,32], index: 0, kind: input, shape index: {}]   ;;  %s1806_s1 = inlined_call_operand.vmem [shape: f32[1,32], index: 1, kind: input, shape index: {}]   ;;  %s1807_s2 = inlined_call_operand.vmem [shape: f32[1,32], index: 2, kind: input, shape index: {}]   ;;  %s1808_s3 = inlined_call_operand.vmem [shape: bf16[32,96], index: 3, kind: input, shape index: {}]   ;;  %s1809_s4 = inlined_call_operand.vmem [shape: bf16[32,32], index: 4, kind: input, shape index: {}]   ;;  %s1810_s5 = inlined_call_operand.vmem [shape: f32[1,32], index: 5, kind: input, shape index: {}]   ;;  %s1811_s6 = inlined_call_operand.vmem [shape: f32[1,32], index: 6, kind: input, shape index: {}]   ;;  %s1812_s7 = inlined_call_operand.vmem [shape: f32[1,32], index: 7, kind: input, shape index: {}]   ;;  %s1813_s8 = inlined_call_operand.vmem [shape: bf16[32,128], index: 8, kind: input, shape index: {}]   ;;  %s1814_s9 = inlined_call_operand.vmem [shape: f32[1,128], index: 9, kind: input, shape index: {}]   ;;  %s1815_s10 = inlined_call_operand.vmem [shape: bf16[128,32], index: 10, kind: input, shape index: {}]   ;;  %s1816_s11 = inlined_call_operand.vmem [shape: f32[1,32], index: 11, kind: input, shape index: {}]   ;;  %s1817_s12 = inlined_call_operand.hbm [shape: bf16[2,8,32], index: 12, kind: output, shape index: {}]  }
   0x1   :  { %1822 = sst [smem:[#allocation11_spill]] %s1805_s0 }
   0x2   :  { %1823 = sst [smem:[#allocation12_spill]] %s1806_s1 }
   0x3   :  { %1824 = sst [smem:[#allocation13_spill]] %s1807_s2 }
   0x4   :  { %17 = vsyncpa [#allocation5], 0 }
   0x5   :  { %19 = vsyncpa [#allocation5 + $0x1], 0  ;;  %s1553_s21 = smov 0   ;;  %s1555_s22 = smov 0  }
   0x6   :  { %s1557_s23 = smov 0   ;;  %s1559_s24 = smov 0  }
   0x7   :  { %s1561_s25 = smov 0   ;;  %s1563_s26 = smov 0  }
   0x8   :  { %s1565_s27 = smov 0   ;;  %s1567_s28 = smov 0  }
   0x9 LB: > { %1825 = sst [smem:[#allocation7_spill]] %s1457_s26  ;;  %s1125_s29 = sadd.s32 4294967295, %s1465_s28   ;;  %s1465_s28 = sphi %s1567_s28, %s25_s28   ;;  %s1461_s27 = sphi %s1565_s27, %s1845_s27   ;;  %s1457_s26 = sphi %s1563_s26, %s1839_s26   ;;  %s1453_s25 = sphi %s1561_s25, %s1844_s25   ;;  %s1449_s24 = sphi %s1559_s24, %s1838_s24   ;;  %s1445_s23 = sphi %s1557_s23, %s1843_s23   ;;  %s1441_s22 = sphi %s1555_s22, %s1842_s22   ;;  %s1437_s21 = sphi %s1553_s21, %s1841_s21  }
   0xa   : > { %s1126_s30 = sadd.s32 4294967294, %s1465_s28   ;;  %s34_s13 = sadd.s32 1, %s1457_s26 }
   0xb   : > { %p35_p0 = scmp.ge.s32.totalorder %s34_s13, 4  ;;  %s37_s14 = sadd.s32 1, %s1461_s27 }
   0xc   : > { %p311_p1 = scmp.ne.s32.totalorder %s1445_s23, %s1441_s22  ;;  %p312_p2 = scmp.eq.s32.totalorder %s1125_s29, 7 }
   0xd   : > { %s1847_s13 = smov (%p35_p0, %s34_s13), 0  ;;  %s1849_s14 = smov (!%p35_p0, %s37_s14), %s1461_s27 }
   0xe   : > { %1826 = sst [smem:[#allocation8_spill]] %s1847_s13  ;;  %p1602_p3 = por %p312_p2, %p311_p1 }
   0xf   : > { %p317_p4 = scmp.ne.s32.totalorder %s1441_s22, %s1437_s21  ;;  %p39_p5 = scmp.ge.s32.totalorder %s1849_s14, 2 }
  0x10   : > { %p318_p6 = scmp.eq.s32.totalorder %s1126_s30, 7  ;;  %p1129_p7 = scmp.ge.s32.totalorder %s1465_s28, 1 }
  0x11   : > { %p376_p8 = scmp.lt.s32.totalorder %s1465_s28, 9  ;;  %s1851_s14 = smov (%p39_p5, %s1849_s14), 0 }
  0x12   : > { %1828 = sst [smem:[#allocation9_spill]] %s1851_s14  ;;  %p1612_p9 = por %p318_p6, %p317_p4 }
  0x13   : > { %p377_p10 = pnand %p1129_p7, %p376_p8  ;;  %s298_s17 = ssub.s32 %s1461_s27, %s1851_s14 }
  0x14   : > { %s1829_s16 = scalar_select %p1612_p9, 1, 0 }
  0x15   : > { %s301_s18 = sadd.s32 1, %s1445_s23  ;;  %p299_p11 = scmp.eq.s32.totalorder %s298_s17, 0 }
  0x16   : > { %1830 = sst [smem:[#allocation10_spill]] %s1829_s16  ;;  %380 = sbr.rel (%p377_p10) target bundleno = 2330 (0x91a), region = 68 }
  0x17   : > { %s1620_s19 = scalar_select %p299_p11, %s1445_s23, %s301_s18  }
  0x18   : > { %s1821_s20 = sand.u32 (!%p377_p10), 1, %s1441_s22   ;;  %p417_p12 = scmp.lt.s32.totalorder (!%p377_p10), %s1453_s25, 1 }
  0x19   : > { %s1626_s29 = sshll.u32 (!%p377_p10), %s1821_s20, 2  ;;  %s1831_s0 = sld [smem:[#allocation11_spill]] (!%p377_p10) }
  0x1a   : > { %p1132_p13 = scmp.ne.s32.totalorder (!%p377_p10), %s1449_s24, 0 }
  0x1b   : > { %s418_s30 = scalar_select %p417_p12, %s1453_s25, 1 }
  0x1c   : > { %425 = sbr.rel (%p1132_p13) target bundleno = 689 (0x2b1), region = 72  ;;  %s1832_s1 = sld [smem:[#allocation12_spill]] (!%p1132_p13) }
  0x1d   : > { %s1131_s13 = sshll.u32 %s418_s30, 2  ;;  %s1833_s2 = sld [smem:[#allocation13_spill]] (!%p1132_p13) }
  0x1e   : > { %s1469_s16 = smov (!%p1132_p13), 96   ;;  %s1470_s20 = smov (!%p1132_p13), 120  }
  0x1f   : > { %s1632_s14 = scalar_lea.vmem %s1831_s0, %s1131_s13  ;;  %s1471_s18 = smov (!%p1132_p13), 64  }
  0x20   : > { %s1472_s30 = smov (!%p1132_p13), 72   ;;  %s1473_s26 = smov (!%p1132_p13), 88  }
  0x21   : > { %v426_v0 = vld [vmem:[%s1632_s14] sm:$0xf]  ;;  %vm430_vm0 = vcmask 261120   ;;  %v1346_v8 = vld [vmem:[%s1808_s3 + $0x8] sm:$0xff]   ;;  %v1467_v9 = vmov 0.0   ;;  %vm1468_vm1 = vmmov 0  }
  0x22   : > { %v427_v1 = vunpack.c.l.bf16 %v426_v0  ;;  %1199 = vmatprep.subr.bf16.mxu0 %v1467_v9  ;;  %1203 = vmatprep.mubr.msk.bf16.mxu0 %vm1468_vm1, %v1467_v9  ;;  %v1347_v10 = vld [vmem:[%s1808_s3] sm:$0xff]   ;;  %vm521_vm2 = vcmask 60416   ;;  %s1474_s13 = smov 56   ;;  %s1475_s17 = smov 80  }
  0x23   : > { %1200 = vmatpush3.bf16.msra.mxu0 %v1346_v8  ;;  %v1133_v15 = vld [vmem:[%s1832_s1] ss:$0 sm:$0xff]  ;;  %s1476_s0 = smov 48   ;;  %s1477_s1 = smov 112  }
  0x24   : > { %v431_v2 = vsel %vm430_vm0, %v427_v1, 0.0  ;;  %1201 = vmatprep.subr.bf16.mxu0 %v1467_v9  ;;  %v1134_v17 = vld [vmem:[%s1833_s2] ss:$0 sm:$0xff]  ;;  %s1479_s2 = smov 40  }
  0x25   : > { %432 = vadd.xlane.f32.xlu0 %v431_v2 }
  0x27   : > { %1202 = vmatpush3.bf16.msra.mxu0 %v1347_v10 }
  0xae   : > { %v433_v3 = vpop.xlane.xlu0 %432 }
  0xaf   : > { %v435_v4 = vmul.f32 0.03125, %v433_v3 }
  0xb1   : > { %v436_v5 = vsub.f32 %v427_v1, %v435_v4 }
  0xb3   : > { %v437_v6 = vmul.f32 %v436_v5, %v436_v5 }
  0xb5   : > { %v438_v7 = vsel %vm430_vm0, %v437_v6, 0.0 }
  0xb6   : > { %439 = vadd.xlane.f32.xlu0 %v438_v7 }
 0x13f   : > { %v440_v11 = vpop.xlane.xlu0 %439 }
 0x140   : > { %v441_v12 = vmul.f32 0.03125, %v440_v11 }
 0x142   : > { %v442_v13 = vadd.f32 1e-05, %v441_v12 }
 0x144   : > { %1348 = vrsqrt.f32 %v442_v13 }
 0x151   : > { %v1349_v14 = vpop.eup %1348 }
 0x152   : > { %v444_v16 = vmul.f32 %v1349_v14, %v436_v5 }
 0x154   : > { %v451_v18 = vmul.f32 %v1133_v15, %v444_v16 }
 0x156   : > { %v458_v19 = vadd.f32 %v1134_v17, %v451_v18 }
 0x158   : > { %v459_v20 = vpack.c.bf16 %v458_v19, %v458_v19 }
 0x15a   : > { %1204 = vmatmul.mubr.msk.bf16.vlgmr.msra.gmra.mxu0 %vm430_vm0, %v459_v20 }
 0x21a   : > { %v513_v21 = vpop.f32.mrf.mxu0 }
 0x21b   : > { %v519_v22 = vmul.f32 0.35355338, %v513_v21  ;;  %v1175_v23 = vpack.c.bf16 %v513_v21, %v513_v21 }
 0x21c   : > { %v1205_v24 = vpop.f32.mrf.mxu0 }
 0x21d   : > { %v520_v25 = vpack.c.bf16 %v519_v22, %v519_v22  ;;  %527 = vrot.lane.b32.xlu1 %v1175_v23, %s1469_s16  ;;  %s1478_s16 = smov 104  }
 0x21e   : > { %v516_v26 = vpop.f32.mrf.mxu0 }
 0x21f   : > { %522 = vst.msk [vmem:[#allocation2] sm:$0xf] %vm521_vm2, %v520_v25  ;;  %540 = vrot.lane.b32.xlu0 %v520_v25, %s1470_s20 }
 0x220   : > { %v1206_v27 = vpop.f32.mrf.mxu0 }
 0x221   : > { %532 = vrot.lane.b32.xlu1 %v1175_v23, %s1471_s18 }
 0x223   : > { %575 = vrot.lane.b32.xlu0 %v1175_v23, %s1472_s30 }
 0x225   : > { %545 = vrot.lane.b32.xlu1 %v1175_v23, %s1473_s26 }
 0x229   : > { %550 = vrot.lane.b32.xlu1 %v1175_v23, %s1474_s13 }
 0x22d   : > { %560 = vrot.lane.b32.xlu1 %v1175_v23, %s1475_s17 }
 0x231   : > { %565 = vrot.lane.b32.xlu1 %v1175_v23, %s1476_s0 }
 0x235   : > { %555 = vrot.lane.b32.xlu1 %v520_v25, %s1477_s1 }
 0x239   : > { %570 = vrot.lane.b32.xlu1 %v520_v25, %s1478_s16 }
 0x23d   : > { %580 = vrot.lane.b32.xlu1 %v1175_v23, %s1479_s2 }
 0x28f   : > { %v528_v28 = vpop.permute.xlu1 %527 }
 0x290   : > { %531 = vst.msk [vmem:[#allocation2 + $0x10] sm:$0xf] %vm521_vm2, %v528_v28 }
 0x291   : > { %v541_v29 = vpop.permute.xlu0 %540 }
 0x292   : > { %544 = vst.msk [vmem:[#allocation2 + $0x4] sm:$0xf] %vm521_vm2, %v541_v29 }
 0x293   : > { %v533_v30 = vpop.permute.xlu1 %532 }
 0x294   : > { %536 = vst.msk [vmem:[#allocation2 + $0x20] sm:$0xf] %vm521_vm2, %v533_v30 }
 0x295   : > { %v576_v31 = vpop.permute.xlu0 %575 }
 0x296   : > { %579 = vst.msk [vmem:[#allocation2 + $0x1c] sm:$0xf] %vm521_vm2, %v576_v31 }
 0x297   : > { %v546_v32 = vpop.permute.xlu1 %545 }
 0x298   : > { %549 = vst.msk [vmem:[#allocation2 + $0x14] sm:$0xf] %vm521_vm2, %v546_v32 }
 0x29b   : > { %v551_v33 = vpop.permute.xlu1 %550 }
 0x29c   : > { %554 = vst.msk [vmem:[#allocation2 + $0x24] sm:$0xf] %vm521_vm2, %v551_v33 }
 0x29f   : > { %v561_v34 = vpop.permute.xlu1 %560 }
 0x2a0   : > { %564 = vst.msk [vmem:[#allocation2 + $0x18] sm:$0xf] %vm521_vm2, %v561_v34 }
 0x2a3   : > { %v566_v35 = vpop.permute.xlu1 %565 }
 0x2a4   : > { %569 = vst.msk [vmem:[#allocation2 + $0x28] sm:$0xf] %vm521_vm2, %v566_v35 }
 0x2a7   : > { %v556_v36 = vpop.permute.xlu1 %555 }
 0x2a8   : > { %559 = vst.msk [vmem:[#allocation2 + $0x8] sm:$0xf] %vm521_vm2, %v556_v36 }
 0x2ab   : > { %v571_v37 = vpop.permute.xlu1 %570 }
 0x2ac   : > { %574 = vst.msk [vmem:[#allocation2 + $0xc] sm:$0xf] %vm521_vm2, %v571_v37 }
 0x2af   : > { %v581_v38 = vpop.permute.xlu1 %580 }
 0x2b0   : > { %584 = vst.msk [vmem:[#allocation2 + $0x2c] sm:$0xf] %vm521_vm2, %v581_v38 }
 0x2b1 PF: > { %s1140_s0 = sshll.u32 %s1449_s24, 2  ;;  %vm596_vm3 = vcmask 64512   ;;  %v1480_v39 = vmov 0.0   ;;  %vm1481_vm4 = vmmov 0   ;;  %vm657_vm5 = vcmask 1043456   ;;  %p1148_p0 = scmp.ne.s32.totalorder %s1449_s24, 3 }
 0x2b2   : > { %1207 = vmatprep.subr.bf16.mxu0 %v1480_v39  ;;  %1209 = vmatprep.mubr.msk.bf16.mxu0 %vm1481_vm4, %v1480_v39  ;;  %s586_s1 = scalar_lea.vmem [#allocation2], %s1140_s0  ;;  %vm705_vm6 = vcmask 60416   ;;  %s704_s2 = scalar_lea.vmem [#allocation3], %s1140_s0 }
 0x2b3   : > { %1213 = vmatprep.subr.bf16.mxu1 %v1480_v39  ;;  %1215 = vmatprep.mubr.msk.bf16.mxu1 %vm1481_vm4, %v1480_v39  ;;  %s1482_s17 = smov (!%p1148_p0), 8   ;;  %s1484_s30 = smov (!%p1148_p0), 24  }
 0x2b4   : > { %s1485_s13 = smov (!%p1148_p0), 16   ;;  %s1834_s20 = scalar_lea.vmem (!%p1148_p0), [#allocation4], %s1626_s29 }
 0x2b7   : > { %v1142_v40 = vld [vmem:[%s586_s1 + $0x10] sm:$0xf]  ;;  %v587_v42 = vld [vmem:[%s586_s1] sm:$0xf] }
 0x2b8   : > { %v601_v41 = vsel %vm596_vm3, %v1142_v40, 0  ;;  %v1144_v48 = vld [vmem:[%s586_s1 + $0x20] sm:$0xf] }
 0x2b9   : > { %1208 = vmatpush3.bf16.xpose.msra.mxu0 %v601_v41  ;;  %v659_v49 = vsel %vm657_vm5, %v1144_v48, 0 }
 0x2ba   : > { %1214 = vmatpush3.bf16.msra.mxu1 %v659_v49 }
 0x2c0   : > { %1210 = vmatmul.mubr.msk.bf16.vlgmr.msra.gmra.mxu0 %vm596_vm3, %v587_v42 }
 0x380   : > { %v637_v43 = vpop.f32.mrf.mxu0 }
 0x381   : > { %v643_v44 = vsel %vm596_vm3, %v637_v43, -inf }
 0x382   : > { %644 = vmax.xlane.f32.xlu0 %v643_v44  ;;  %v1211_v45 = vpop.f32.mrf.mxu0 }
 0x384   : > { %v640_v46 = vpop.f32.mrf.mxu0 }
 0x386   : > { %v1212_v47 = vpop.f32.mrf.mxu0 }
 0x40b   : > { %v645_v50 = vpop.xlane.xlu0 %644 }
 0x40c   : > { %v646_v51 = vsub.f32 %v637_v43, %v645_v50 }
 0x40e   : > { %v647_v52 = vmul.f32 1.442695, %v646_v51 }
 0x410   : > { %1350 = vpow2.f32 %v647_v52 }
 0x41d   : > { %v1351_v53 = vpop.eup %1350 }
 0x41e   : > { %v649_v54 = vsel %vm596_vm3, %v1351_v53, 0.0  ;;  %v653_v55 = vpack.c.bf16 %v1351_v53, %v1351_v53 }
 0x41f   : > { %650 = vadd.xlane.f32.xlu0 %v649_v54 }
 0x420   : > { %1216 = vmatmul.mubr.msk.bf16.vlgmr.msra.gmra.mxu1 %vm596_vm3, %v653_v55 }
 0x4a8   : > { %v651_v56 = vpop.xlane.xlu0 %650 }
 0x4a9   : > { %1352 = vrcp.f32 %v651_v56 }
 0x4b6   : > { %v1353_v57 = vpop.eup %1352 }
 0x4e0   : > { %v695_v58 = vpop.f32.mrf.mxu1 }
 0x4e1   : > { %v701_v59 = vmul.f32 %v1353_v57, %v695_v58 }
 0x4e2   : > { %v1217_v60 = vpop.f32.mrf.mxu1  ;;  %710 = sbr.rel (%p1148_p0) target bundleno = 2305 (0x901), region = 76 }
 0x4e3   : > { %v702_v61 = vpack.c.bf16 %v701_v59, %v701_v59 }
 0x4e4   : > { %v698_v62 = vpop.f32.mrf.mxu1 }
 0x4e5   : > { %706 = vst.msk [vmem:[%s704_s2] sm:$0xf] %vm705_vm6, %v702_v61 }
 0x4e6   : > { %v1218_v63 = vpop.f32.mrf.mxu1 }
 0x4e7   : > { %v1483_v3 = vmov 0.0   ;;  %v1357_v4 = vld [vmem:[%s1809_s4 + $0x8] sm:$0xff]   ;;  %v1358_v5 = vld [vmem:[%s1809_s4] sm:$0xff]   ;;  %vm1486_vm7 = vmmov 0   ;;  %vm738_vm8 = vcmask 130048   ;;  %vm741_vm9 = vcmask 195584  }
 0x4e8   : > { %1219 = vmatprep.subr.bf16.mxu1 %v1483_v3  ;;  %1235 = vmatprep.subr.bf16.mxu0 %v1483_v3  ;;  %vm760_vm10 = vcmask 261120   ;;  %v711_v13 = vld [vmem:[%s1632_s14] sm:$0xf]  ;;  %v1359_v28 = vld [vmem:[%s1813_s8 + $0x8] sm:$0xff]   ;;  %v1361_v30 = vld [vmem:[%s1815_s10 + $0x38] sm:$0xff]   ;;  %vm1029_vm11 = vcmask 257024  }
 0x4e9   : > { %1220 = vmatpush3.bf16.msra.mxu1 %v1357_v4  ;;  %1223 = vmatprep.mubr.msk.bf16.mxu1 %vm1486_vm7, %v1483_v3  ;;  %v712_v14 = vunpack.c.l.bf16 %v711_v13  ;;  %v1155_v16 = vld [vmem:[%s1810_s5] ss:$0 sm:$0xff]  ;;  %v1362_v31 = vld [vmem:[%s1815_s10 + $0x30] sm:$0xff]   ;;  %v1363_v42 = vld [vmem:[%s1815_s10 + $0x28] sm:$0xff]  }
 0x4ea   : > { %1221 = vmatprep.subr.bf16.mxu1 %v1483_v3  ;;  %1251 = vmatprep.mubr.msk.bf16.mxu0 %vm1486_vm7, %v1483_v3  ;;  %v1360_v29 = vld [vmem:[%s1813_s8] sm:$0xff]   ;;  %v1365_v44 = vld [vmem:[%s1815_s10 + $0x18] sm:$0xff]   ;;  %v1366_v45 = vld [vmem:[%s1815_s10 + $0x10] sm:$0xff]  }
 0x4eb   : > { %1236 = vmatpush3.bf16.msra.mxu0 %v1361_v30  ;;  %v1156_v36 = vld [vmem:[%s1811_s6] ss:$0 sm:$0xff]  ;;  %v1367_v46 = vld [vmem:[%s1815_s10 + $0x8] sm:$0xff]  }
 0x4ec   : > { %v1354_v0 = vld [vmem:[#allocation3 + $0x4] ss:$0 sps:$4 sm:$0xff]   ;;  %v1355_v1 = vld [vmem:[#allocation3 + $0x8] ss:$0 sps:$4 sm:$0xff]   ;;  %v1356_v2 = vld [vmem:[#allocation3 + $0xc] ss:$0 sps:$4 sm:$0xff]   ;;  %1237 = vmatprep.subr.bf16.mxu0 %v1483_v3 }
 0x4ed   : > { %723 = vrot.lane.b32.xlu0 %v1354_v0, %s1482_s17  ;;  %733 = vrot.lane.b32.xlu1 %v1356_v2, %s1484_s30  ;;  %v713_v7 = vld [vmem:[#allocation3] sm:$0xf]  ;;  %v1157_v38 = vld [vmem:[%s1812_s7] ss:$0 sm:$0xff] }
 0x4ee   : > { %1222 = vmatpush3.bf16.msra.mxu1 %v1358_v5  ;;  %v1364_v43 = vld [vmem:[%s1815_s10 + $0x20] sm:$0xff]  }
 0x4ef   : > { %1227 = vmatprep.subr.bf16.mxu1 %v1483_v3  ;;  %1238 = vmatpush3.bf16.msra.mxu0 %v1362_v31  ;;  %v1368_v47 = vld [vmem:[%s1815_s10] sm:$0xff]  }
 0x4f0   : > { %1239 = vmatprep.subr.bf16.mxu0 %v1483_v3  ;;  %v1159_v48 = vld [vmem:[%s1814_s9] ss:$0 sm:$0xff] }
 0x4f1   : > { %728 = vrot.lane.b32.xlu0 %v1355_v1, %s1485_s13  ;;  %v1158_v60 = vld [vmem:[%s1816_s11] ss:$0 sm:$0xff] }
 0x4f3   : > { %1240 = vmatpush3.bf16.msra.mxu0 %v1363_v42 }
 0x4f4   : > { %1241 = vmatprep.subr.bf16.mxu0 %v1483_v3 }
 0x4f7   : > { %1242 = vmatpush3.bf16.msra.mxu0 %v1364_v43 }
 0x4f8   : > { %1243 = vmatprep.subr.bf16.mxu0 %v1483_v3 }
 0x4fb   : > { %1244 = vmatpush3.bf16.msra.mxu0 %v1365_v44 }
 0x4fc   : > { %1245 = vmatprep.subr.bf16.mxu0 %v1483_v3 }
 0x4ff   : > { %1246 = vmatpush3.bf16.msra.mxu0 %v1366_v45 }
 0x500   : > { %1247 = vmatprep.subr.bf16.mxu0 %v1483_v3 }
 0x503   : > { %1248 = vmatpush3.bf16.msra.mxu0 %v1367_v46 }
 0x504   : > { %1249 = vmatprep.subr.bf16.mxu0 %v1483_v3 }
 0x507   : > { %1250 = vmatpush3.bf16.msra.mxu0 %v1368_v47 }
 0x55f   : > { %v724_v6 = vpop.permute.xlu0 %723  ;;  %v734_v8 = vpop.permute.xlu1 %733 }
 0x560   : > { %v737_v9 = vsel %vm596_vm3, %v713_v7, %v724_v6 }
 0x563   : > { %v729_v10 = vpop.permute.xlu0 %728 }
 0x564   : > { %v740_v11 = vsel %vm738_vm8, %v737_v9, %v729_v10 }
 0x565   : > { %v743_v12 = vsel %vm741_vm9, %v740_v11, %v734_v8 }
 0x566   : > { %1224 = vmatmul.mubr.msk.bf16.vlgmr.msra.gmra.mxu1 %vm760_vm10, %v743_v12 }
 0x567   : > { %1231 = vmatprep.mubr.msk.bf16.mxu1 %vm1486_vm7, %v1483_v3  ;;  %1228 = vmatpush3.bf16.msra.mxu1 %v1359_v28 }
 0x568   : > { %1229 = vmatprep.subr.bf16.mxu1 %v1483_v3 }
 0x56b   : > { %1230 = vmatpush3.bf16.msra.mxu1 %v1360_v29 }
 0x626   : > { %v797_v15 = vpop.f32.mrf.mxu1 }
 0x627   : > { %v803_v17 = vadd.f32 %v797_v15, %v712_v14 }
 0x628   : > { %v1225_v18 = vpop.f32.mrf.mxu1 }
 0x629   : > { %v1697_v19 = vadd.f32 %v1155_v16, %v803_v17 }
 0x62a   : > { %v800_v20 = vpop.f32.mrf.mxu1 }
 0x62b   : > { %v814_v21 = vsel %vm760_vm10, %v1697_v19, 0.0  ;;  %v850_v61 = vadd.f32 %v1158_v60, %v1697_v19 }
 0x62c   : > { %v1226_v22 = vpop.f32.mrf.mxu1  ;;  %815 = vadd.xlane.f32.xlu1 %v814_v21 }
 0x6b5   : > { %v816_v23 = vpop.xlane.xlu1 %815 }
 0x6b6   : > { %v818_v24 = vmul.f32 0.03125, %v816_v23 }
 0x6b8   : > { %v819_v25 = vsub.f32 %v1697_v19, %v818_v24 }
 0x6ba   : > { %v820_v26 = vmul.f32 %v819_v25, %v819_v25 }
 0x6bc   : > { %v821_v27 = vsel %vm760_vm10, %v820_v26, 0.0 }
 0x6bd   : > { %822 = vadd.xlane.f32.xlu0 %v821_v27 }
 0x746   : > { %v823_v32 = vpop.xlane.xlu0 %822 }
 0x747   : > { %v824_v33 = vmul.f32 0.03125, %v823_v32 }
 0x749   : > { %v825_v34 = vadd.f32 1e-05, %v824_v33 }
 0x74b   : > { %1369 = vrsqrt.f32 %v825_v34 }
 0x758   : > { %v1370_v35 = vpop.eup %1369 }
 0x759   : > { %v827_v37 = vmul.f32 %v1370_v35, %v819_v25 }
 0x75b   : > { %v834_v39 = vmul.f32 %v1156_v36, %v827_v37 }
 0x75d   : > { %v841_v40 = vadd.f32 %v1157_v38, %v834_v39 }
 0x75f   : > { %v842_v41 = vpack.c.bf16 %v841_v40, %v841_v40 }
 0x761   : > { %1232 = vmatmul.mubr.msk.bf16.vlgmr.msra.gmra.mxu1 %vm760_vm10, %v842_v41 }
 0x821   : > { %v911_v49 = vpop.f32.mrf.mxu1 }
 0x822   : > { %v912_v50 = vadd.f32 %v1159_v48, %v911_v49 }
 0x823   : > { %v1233_v51 = vpop.f32.mrf.mxu1 }
 0x824   : > { %v918_v52 = vmul.f32 0.70710677, %v912_v50  ;;  %v917_v56 = vmul.f32 0.5, %v912_v50 }
 0x825   : > { %v914_v53 = vpop.f32.mrf.mxu1 }
 0x826   : > { %1371 = verf.f32 %v918_v52 }
 0x827   : > { %v1234_v54 = vpop.f32.mrf.mxu1 }
 0x833   : > { %v1372_v55 = vpop.eup %1371 }
 0x834   : > { %v920_v57 = vadd.f32 1.0, %v1372_v55 }
 0x836   : > { %v921_v58 = vmul.f32 %v920_v57, %v917_v56 }
 0x838   : > { %v922_v59 = vpack.c.bf16 %v921_v58, %v921_v58 }
 0x83a   : > { %1252 = vmatmul.mubr.bf16.vlgmr.msra.gmra.mxu0 %v922_v59 }
 0x8fa   : > { %v1021_v62 = vpop.f32.mrf.mxu0 }
 0x8fb   : > { %v1027_v63 = vadd.f32 %v1021_v62, %v850_v61 }
 0x8fc   : > { %v1253_v0 = vpop.f32.mrf.mxu0 }
 0x8fd   : > { %v1028_v1 = vpack.c.bf16 %v1027_v63, %v1027_v63 }
 0x8fe   : > { %v1024_v2 = vpop.f32.mrf.mxu0 }
 0x8ff   : > { %1030 = vst.msk [vmem:[%s1834_s20] sm:$0xf] %vm1029_vm11, %v1028_v1 }
 0x900   : > { %v1254_v3 = vpop.f32.mrf.mxu0 }
 0x901 PF: > { %s1172_s18 = sshll.u32 %s1453_s25, 6  ;;  %s1835_s13 = scalar_lea.vmem [#allocation4], %s1626_s29 }
 0x902   : > { %s1043_s24 = scalar_lea.hbm %s1817_s12, %s1172_s18  ;;  %s1045_s16 = sshll.u32 %s1835_s13, 4  ;;  %s1046_s16 = int_to_ptr.vmem [resolvable:$true] %s1045_s16 }
 0x903   : > { %s1836_s0 = sand.u32 1, %s1441_s22   ;;  %s1373_s1 = scalar_lea.vmem %s1046_s16, 64 }
 0x904   : > { %s1032_s14 = scalar_lea.sflag [#allocation5], %s1836_s0  ;;  %p1374_p1 = scmp.ne.s32.totalorder %s1046_s16, %s1373_s1 }
 0x905   : > { %s1487_s2 = smov [#allocation4]  }
 0x906   : > { %p1375_p2 = pnand %p1374_p1, %p1602_p3  ;;  %s1377_s17 = sshll.u32 %s1487_s2, 4  ;;  %s1378_s17 = int_to_ptr.vmem [resolvable:$false] %s1377_s17 }
 0x907   : > { %s1379_s20 = scalar_lea.vmem %s1378_s17, 128  ;;  %p1380_p5 = scmp.lt.s32.totalorder %s1046_s16, %s1378_s17 }
 0x908   : > { %p1376_p4 = pneg %p1375_p2  ;;  %p1381_p6 = scmp.lt.s32.totalorder %s1379_s20, %s1373_s1 }
 0x90a   : > { %p1382_p7 = por %p1381_p6, %p1380_p5 }
 0x90c   : > { %p1383_p8 = pnand %p1382_p7, %p1376_p4 }
 0x90e   : > { %1386 = shalt.err (!%p1383_p8)
}
 0x90f   : > { %s1387_s25 = scalar_lea.hbm %s1043_s24, 64  ;;  %s1391_s30 = scalar_lea.hbm %s1817_s12, 128 }
 0x910   : > { %p1388_p10 = scmp.ne.s32.totalorder %s1043_s24, %s1387_s25  ;;  %p1392_p13 = scmp.lt.s32.totalorder %s1043_s24, %s1817_s12 }
 0x911   : > { %p1393_p0 = scmp.lt.s32.totalorder %s1391_s30, %s1387_s25 }
 0x912   : > { %p1389_p11 = pnand %p1388_p10, %p1602_p3 }
 0x913   : > { %p1394_p1 = por %p1393_p0, %p1392_p13 }
 0x914   : > { %p1390_p12 = pneg %p1389_p11 }
 0x916   : > { %p1395_p2 = pnand %p1394_p1, %p1390_p12 }
 0x918   : > { %1398 = shalt.err (!%p1395_p2)
}
 0x919   : > { %1255 = dma.vmem_to_hbm [thread:$0]  (%p1602_p3), %s1046_s16, 64, %s1043_s24, %s1032_s14  }
 0x91a PF: > { %p1261_p4 = scmp.ge.s32.totalorder %s1465_s28, 2  ;;  %s1057_s1 = sand.u32 1, %s1437_s21  }
 0x91b   : > { %s1058_s2 = scalar_lea.sflag [#allocation5], %s1057_s1 }
 0x91c   : > { %p1258_p5 = pnand %p1261_p4, %p1612_p9 }
 0x91e   : > { %p1259_p6 = pneg %p1258_p5 }
 0x920   : > { %1432 = dma.done.wait (%p1259_p6), %s1058_s2, 64  }
 0x921   : > { %1434 = vsyncadd (%p1259_p6), %s1058_s2, 4294967232  ;;  %s25_s28 = sadd.s32 1, %s1465_s28   ;;  %s1838_s24 = sld [smem:[#allocation7_spill]] }
 0x922   : > { %p22_p7 = scmp.ge.s32.totalorder %s25_s28, 10   ;;  %s1839_s26 = sld [smem:[#allocation8_spill]] }
 0x923   : > { %s1840_s15 = sld [smem:[#allocation9_spill]]  ;;  %s1841_s21 = smov %s1441_s22 }
 0x924   : > { %s1842_s22 = smov %s1445_s23  ;;  %s1843_s23 = smov %s1620_s19 }
 0x925   : > { %s1844_s25 = smov %s1461_s27  ;;  %24 = sbr.rel (!%p22_p7) target bundleno = 9 (0x9), region = 129 }
 0x929   : > { %s1845_s27 = smov %s1840_s15 }
 0x92a   :  { %1063 = vsyncpa [#allocation5], 1 }
 0x92b   :  { %1065 = vsyncpa [#allocation5 + $0x1], 1 }

// kernel: tpu_custom_call.1
= control target key start
LH: loop header
LB: loop body
LE: loop exit
PB: predicated region body
PF: predicated region fallthrough
CT: control target
= control target key end

     0   :  { %s1805_s0 = inlined_call_operand.vmem [shape: bf16[2,8,32], index: 0, kind: input, shape index: {}]   ;;  %s1806_s1 = inlined_call_operand.vmem [shape: f32[1,32], index: 1, kind: input, shape index: {}]   ;;  %s1807_s2 = inlined_call_operand.vmem [shape: f32[1,32], index: 2, kind: input, shape index: {}]   ;;  %s1808_s3 = inlined_call_operand.vmem [shape: bf16[32,96], index: 3, kind: input, shape index: {}]   ;;  %s1809_s4 = inlined_call_operand.vmem [shape: bf16[32,32], index: 4, kind: input, shape index: {}]   ;;  %s1810_s5 = inlined_call_operand.vmem [shape: f32[1,32], index: 5, kind: input, shape index: {}]   ;;  %s1811_s6 = inlined_call_operand.vmem [shape: f32[1,32], index: 6, kind: input, shape index: {}]   ;;  %s1812_s7 = inlined_call_operand.vmem [shape: f32[1,32], index: 7, kind: input, shape index: {}]   ;;  %s1813_s8 = inlined_call_operand.vmem [shape: bf16[32,128], index: 8, kind: input, shape index: {}]   ;;  %s1814_s9 = inlined_call_operand.vmem [shape: f32[1,128], index: 9, kind: input, shape index: {}]   ;;  %s1815_s10 = inlined_call_operand.vmem [shape: bf16[128,32], index: 10, kind: input, shape index: {}]   ;;  %s1816_s11 = inlined_call_operand.vmem [shape: f32[1,32], index: 11, kind: input, shape index: {}]   ;;  %s1817_s12 = inlined_call_operand.hbm [shape: bf16[2,8,32], index: 12, kind: output, shape index: {}]  }
   0x1   :  { %1822 = sst [smem:[#allocation11_spill]] %s1805_s0 }
   0x2   :  { %1823 = sst [smem:[#allocation12_spill]] %s1806_s1 }
   0x3   :  { %1824 = sst [smem:[#allocation13_spill]] %s1807_s2 }
   0x4   :  { %17 = vsyncpa [#allocation5], 0 }
   0x5   :  { %19 = vsyncpa [#allocation5 + $0x1], 0  ;;  %s1553_s21 = smov 0   ;;  %s1555_s22 = smov 0  }
   0x6   :  { %s1557_s23 = smov 0   ;;  %s1559_s24 = smov 0  }
   0x7   :  { %s1561_s25 = smov 0   ;;  %s1563_s26 = smov 0  }
   0x8   :  { %s1565_s27 = smov 0   ;;  %s1567_s28 = smov 0  }
   0x9 LB: > { %1825 = sst [smem:[#allocation7_spill]] %s1457_s26  ;;  %s1125_s29 = sadd.s32 4294967295, %s1465_s28   ;;  %s1465_s28 = sphi %s1567_s28, %s25_s28   ;;  %s1461_s27 = sphi %s1565_s27, %s1845_s27   ;;  %s1457_s26 = sphi %s1563_s26, %s1839_s26   ;;  %s1453_s25 = sphi %s1561_s25, %s1844_s25   ;;  %s1449_s24 = sphi %s1559_s24, %s1838_s24   ;;  %s1445_s23 = sphi %s1557_s23, %s1843_s23   ;;  %s1441_s22 = sphi %s1555_s22, %s1842_s22   ;;  %s1437_s21 = sphi %s1553_s21, %s1841_s21  }
   0xa   : > { %s1126_s30 = sadd.s32 4294967294, %s1465_s28   ;;  %s34_s13 = sadd.s32 1, %s1457_s26 }
   0xb   : > { %p35_p0 = scmp.ge.s32.totalorder %s34_s13, 4  ;;  %s37_s14 = sadd.s32 1, %s1461_s27 }
   0xc   : > { %p311_p1 = scmp.ne.s32.totalorder %s1445_s23, %s1441_s22  ;;  %p312_p2 = scmp.eq.s32.totalorder %s1125_s29, 7 }
   0xd   : > { %s1847_s13 = smov (%p35_p0, %s34_s13), 0  ;;  %s1849_s14 = smov (!%p35_p0, %s37_s14), %s1461_s27 }
   0xe   : > { %1826 = sst [smem:[#allocation8_spill]] %s1847_s13  ;;  %p1602_p3 = por %p312_p2, %p311_p1 }
   0xf   : > { %p317_p4 = scmp.ne.s32.totalorder %s1441_s22, %s1437_s21  ;;  %p39_p5 = scmp.ge.s32.totalorder %s1849_s14, 2 }
  0x10   : > { %p318_p6 = scmp.eq.s32.totalorder %s1126_s30, 7  ;;  %p1129_p7 = scmp.ge.s32.totalorder %s1465_s28, 1 }
  0x11   : > { %p376_p8 = scmp.lt.s32.totalorder %s1465_s28, 9  ;;  %s1851_s14 = smov (%p39_p5, %s1849_s14), 0 }
  0x12   : > { %1828 = sst [smem:[#allocation9_spill]] %s1851_s14  ;;  %p1612_p9 = por %p318_p6, %p317_p4 }
  0x13   : > { %p377_p10 = pnand %p1129_p7, %p376_p8  ;;  %s298_s17 = ssub.s32 %s1461_s27, %s1851_s14 }
  0x14   : > { %s1829_s16 = scalar_select %p1612_p9, 1, 0 }
  0x15   : > { %s301_s18 = sadd.s32 1, %s1445_s23  ;;  %p299_p11 = scmp.eq.s32.totalorder %s298_s17, 0 }
  0x16   : > { %1830 = sst [smem:[#allocation10_spill]] %s1829_s16  ;;  %380 = sbr.rel (%p377_p10) target bundleno = 2330 (0x91a), region = 68 }
  0x17   : > { %s1620_s19 = scalar_select %p299_p11, %s1445_s23, %s301_s18  }
  0x18   : > { %s1821_s20 = sand.u32 (!%p377_p10), 1, %s1441_s22   ;;  %p417_p12 = scmp.lt.s32.totalorder (!%p377_p10), %s1453_s25, 1 }
  0x19   : > { %s1626_s29 = sshll.u32 (!%p377_p10), %s1821_s20, 2  ;;  %s1831_s0 = sld [smem:[#allocation11_spill]] (!%p377_p10) }
  0x1a   : > { %p1132_p13 = scmp.ne.s32.totalorder (!%p377_p10), %s1449_s24, 0 }
  0x1b   : > { %s418_s30 = scalar_select %p417_p12, %s1453_s25, 1 }
  0x1c   : > { %425 = sbr.rel (%p1132_p13) target bundleno = 689 (0x2b1), region = 72  ;;  %s1832_s1 = sld [smem:[#allocation12_spill]] (!%p1132_p13) }
  0x1d   : > { %s1131_s13 = sshll.u32 %s418_s30, 2  ;;  %s1833_s2 = sld [smem:[#allocation13_spill]] (!%p1132_p13) }
  0x1e   : > { %s1469_s16 = smov (!%p1132_p13), 96   ;;  %s1470_s20 = smov (!%p1132_p13), 120  }
  0x1f   : > { %s1632_s14 = scalar_lea.vmem %s1831_s0, %s1131_s13  ;;  %s1471_s18 = smov (!%p1132_p13), 64  }
  0x20   : > { %s1472_s30 = smov (!%p1132_p13), 72   ;;  %s1473_s26 = smov (!%p1132_p13), 88  }
  0x21   : > { %v426_v0 = vld [vmem:[%s1632_s14] sm:$0xf]  ;;  %vm430_vm0 = vcmask 261120   ;;  %v1346_v8 = vld [vmem:[%s1808_s3 + $0x8] sm:$0xff]   ;;  %v1467_v9 = vmov 0.0   ;;  %vm1468_vm1 = vmmov 0  }
  0x22   : > { %v427_v1 = vunpack.c.l.bf16 %v426_v0  ;;  %1199 = vmatprep.subr.bf16.mxu0 %v1467_v9  ;;  %1203 = vmatprep.mubr.msk.bf16.mxu0 %vm1468_vm1, %v1467_v9  ;;  %v1347_v10 = vld [vmem:[%s1808_s3] sm:$0xff]   ;;  %vm521_vm2 = vcmask 60416   ;;  %s1474_s13 = smov 56   ;;  %s1475_s17 = smov 80  }
  0x23   : > { %1200 = vmatpush3.bf16.msra.mxu0 %v1346_v8  ;;  %v1133_v15 = vld [vmem:[%s1832_s1] ss:$0 sm:$0xff]  ;;  %s1476_s0 = smov 48   ;;  %s1477_s1 = smov 112  }
  0x24   : > { %v431_v2 = vsel %vm430_vm0, %v427_v1, 0.0  ;;  %1201 = vmatprep.subr.bf16.mxu0 %v1467_v9  ;;  %v1134_v17 = vld [vmem:[%s1833_s2] ss:$0 sm:$0xff]  ;;  %s1479_s2 = smov 40  }
  0x25   : > { %432 = vadd.xlane.f32.xlu0 %v431_v2 }
  0x27   : > { %1202 = vmatpush3.bf16.msra.mxu0 %v1347_v10 }
  0xae   : > { %v433_v3 = vpop.xlane.xlu0 %432 }
  0xaf   : > { %v435_v4 = vmul.f32 0.03125, %v433_v3 }
  0xb1   : > { %v436_v5 = vsub.f32 %v427_v1, %v435_v4 }
  0xb3   : > { %v437_v6 = vmul.f32 %v436_v5, %v436_v5 }
  0xb5   : > { %v438_v7 = vsel %vm430_vm0, %v437_v6, 0.0 }
  0xb6   : > { %439 = vadd.xlane.f32.xlu0 %v438_v7 }
 0x13f   : > { %v440_v11 = vpop.xlane.xlu0 %439 }
 0x140   : > { %v441_v12 = vmul.f32 0.03125, %v440_v11 }
 0x142   : > { %v442_v13 = vadd.f32 1e-05, %v441_v12 }
 0x144   : > { %1348 = vrsqrt.f32 %v442_v13 }
 0x151   : > { %v1349_v14 = vpop.eup %1348 }
 0x152   : > { %v444_v16 = vmul.f32 %v1349_v14, %v436_v5 }
 0x154   : > { %v451_v18 = vmul.f32 %v1133_v15, %v444_v16 }
 0x156   : > { %v458_v19 = vadd.f32 %v1134_v17, %v451_v18 }
 0x158   : > { %v459_v20 = vpack.c.bf16 %v458_v19, %v458_v19 }
 0x15a   : > { %1204 = vmatmul.mubr.msk.bf16.vlgmr.msra.gmra.mxu0 %vm430_vm0, %v459_v20 }
 0x21a   : > { %v513_v21 = vpop.f32.mrf.mxu0 }
 0x21b   : > { %v519_v22 = vmul.f32 0.35355338, %v513_v21  ;;  %v1175_v23 = vpack.c.bf16 %v513_v21, %v513_v21 }
 0x21c   : > { %v1205_v24 = vpop.f32.mrf.mxu0 }
 0x21d   : > { %v520_v25 = vpack.c.bf16 %v519_v22, %v519_v22  ;;  %527 = vrot.lane.b32.xlu1 %v1175_v23, %s1469_s16  ;;  %s1478_s16 = smov 104  }
 0x21e   : > { %v516_v26 = vpop.f32.mrf.mxu0 }
 0x21f   : > { %522 = vst.msk [vmem:[#allocation2] sm:$0xf] %vm521_vm2, %v520_v25  ;;  %540 = vrot.lane.b32.xlu0 %v520_v25, %s1470_s20 }
 0x220   : > { %v1206_v27 = vpop.f32.mrf.mxu0 }
 0x221   : > { %532 = vrot.lane.b32.xlu1 %v1175_v23, %s1471_s18 }
 0x223   : > { %575 = vrot.lane.b32.xlu0 %v1175_v23, %s1472_s30 }
 0x225   : > { %545 = vrot.lane.b32.xlu1 %v1175_v23, %s1473_s26 }
 0x229   : > { %550 = vrot.lane.b32.xlu1 %v1175_v23, %s1474_s13 }
 0x22d   : > { %560 = vrot.lane.b32.xlu1 %v1175_v23, %s1475_s17 }
 0x231   : > { %565 = vrot.lane.b32.xlu1 %v1175_v23, %s1476_s0 }
 0x235   : > { %555 = vrot.lane.b32.xlu1 %v520_v25, %s1477_s1 }
 0x239   : > { %570 = vrot.lane.b32.xlu1 %v520_v25, %s1478_s16 }
 0x23d   : > { %580 = vrot.lane.b32.xlu1 %v1175_v23, %s1479_s2 }
 0x28f   : > { %v528_v28 = vpop.permute.xlu1 %527 }
 0x290   : > { %531 = vst.msk [vmem:[#allocation2 + $0x10] sm:$0xf] %vm521_vm2, %v528_v28 }
 0x291   : > { %v541_v29 = vpop.permute.xlu0 %540 }
 0x292   : > { %544 = vst.msk [vmem:[#allocation2 + $0x4] sm:$0xf] %vm521_vm2, %v541_v29 }
 0x293   : > { %v533_v30 = vpop.permute.xlu1 %532 }
 0x294   : > { %536 = vst.msk [vmem:[#allocation2 + $0x20] sm:$0xf] %vm521_vm2, %v533_v30 }
 0x295   : > { %v576_v31 = vpop.permute.xlu0 %575 }
 0x296   : > { %579 = vst.msk [vmem:[#allocation2 + $0x1c] sm:$0xf] %vm521_vm2, %v576_v31 }
 0x297   : > { %v546_v32 = vpop.permute.xlu1 %545 }
 0x298   : > { %549 = vst.msk [vmem:[#allocation2 + $0x14] sm:$0xf] %vm521_vm2, %v546_v32 }
 0x29b   : > { %v551_v33 = vpop.permute.xlu1 %550 }
 0x29c   : > { %554 = vst.msk [vmem:[#allocation2 + $0x24] sm:$0xf] %vm521_vm2, %v551_v33 }
 0x29f   : > { %v561_v34 = vpop.permute.xlu1 %560 }
 0x2a0   : > { %564 = vst.msk [vmem:[#allocation2 + $0x18] sm:$0xf] %vm521_vm2, %v561_v34 }
 0x2a3   : > { %v566_v35 = vpop.permute.xlu1 %565 }
 0x2a4   : > { %569 = vst.msk [vmem:[#allocation2 + $0x28] sm:$0xf] %vm521_vm2, %v566_v35 }
 0x2a7   : > { %v556_v36 = vpop.permute.xlu1 %555 }
 0x2a8   : > { %559 = vst.msk [vmem:[#allocation2 + $0x8] sm:$0xf] %vm521_vm2, %v556_v36 }
 0x2ab   : > { %v571_v37 = vpop.permute.xlu1 %570 }
 0x2ac   : > { %574 = vst.msk [vmem:[#allocation2 + $0xc] sm:$0xf] %vm521_vm2, %v571_v37 }
 0x2af   : > { %v581_v38 = vpop.permute.xlu1 %580 }
 0x2b0   : > { %584 = vst.msk [vmem:[#allocation2 + $0x2c] sm:$0xf] %vm521_vm2, %v581_v38 }
 0x2b1 PF: > { %s1140_s0 = sshll.u32 %s1449_s24, 2  ;;  %vm596_vm3 = vcmask 64512   ;;  %v1480_v39 = vmov 0.0   ;;  %vm1481_vm4 = vmmov 0   ;;  %vm657_vm5 = vcmask 1043456   ;;  %p1148_p0 = scmp.ne.s32.totalorder %s1449_s24, 3 }
 0x2b2   : > { %1207 = vmatprep.subr.bf16.mxu0 %v1480_v39  ;;  %1209 = vmatprep.mubr.msk.bf16.mxu0 %vm1481_vm4, %v1480_v39  ;;  %s586_s1 = scalar_lea.vmem [#allocation2], %s1140_s0  ;;  %vm705_vm6 = vcmask 60416   ;;  %s704_s2 = scalar_lea.vmem [#allocation3], %s1140_s0 }
 0x2b3   : > { %1213 = vmatprep.subr.bf16.mxu1 %v1480_v39  ;;  %1215 = vmatprep.mubr.msk.bf16.mxu1 %vm1481_vm4, %v1480_v39  ;;  %s1482_s17 = smov (!%p1148_p0), 8   ;;  %s1484_s30 = smov (!%p1148_p0), 24  }
 0x2b4   : > { %s1485_s13 = smov (!%p1148_p0), 16   ;;  %s1834_s20 = scalar_lea.vmem (!%p1148_p0), [#allocation4], %s1626_s29 }
 0x2b7   : > { %v1142_v40 = vld [vmem:[%s586_s1 + $0x10] sm:$0xf]  ;;  %v587_v42 = vld [vmem:[%s586_s1] sm:$0xf] }
 0x2b8   : > { %v601_v41 = vsel %vm596_vm3, %v1142_v40, 0  ;;  %v1144_v48 = vld [vmem:[%s586_s1 + $0x20] sm:$0xf] }
 0x2b9   : > { %1208 = vmatpush3.bf16.xpose.msra.mxu0 %v601_v41  ;;  %v659_v49 = vsel %vm657_vm5, %v1144_v48, 0 }
 0x2ba   : > { %1214 = vmatpush3.bf16.msra.mxu1 %v659_v49 }
 0x2c0   : > { %1210 = vmatmul.mubr.msk.bf16.vlgmr.msra.gmra.mxu0 %vm596_vm3, %v587_v42 }
 0x380   : > { %v637_v43 = vpop.f32.mrf.mxu0 }
 0x381   : > { %v643_v44 = vsel %vm596_vm3, %v637_v43, -inf }
 0x382   : > { %644 = vmax.xlane.f32.xlu0 %v643_v44  ;;  %v1211_v45 = vpop.f32.mrf.mxu0 }
 0x384   : > { %v640_v46 = vpop.f32.mrf.mxu0 }
 0x386   : > { %v1212_v47 = vpop.f32.mrf.mxu0 }
 0x40b   : > { %v645_v50 = vpop.xlane.xlu0 %644 }
 0x40c   : > { %v646_v51 = vsub.f32 %v637_v43, %v645_v50 }
 0x40e   : > { %v647_v52 = vmul.f32 1.442695, %v646_v51 }
 0x410   : > { %1350 = vpow2.f32 %v647_v52 }
 0x41d   : > { %v1351_v53 = vpop.eup %1350 }
 0x41e   : > { %v649_v54 = vsel %vm596_vm3, %v1351_v53, 0.0  ;;  %v653_v55 = vpack.c.bf16 %v1351_v53, %v1351_v53 }
 0x41f   : > { %650 = vadd.xlane.f32.xlu0 %v649_v54 }
 0x420   : > { %1216 = vmatmul.mubr.msk.bf16.vlgmr.msra.gmra.mxu1 %vm596_vm3, %v653_v55 }
 0x4a8   : > { %v651_v56 = vpop.xlane.xlu0 %650 }
 0x4a9   : > { %1352 = vrcp.f32 %v651_v56 }
 0x4b6   : > { %v1353_v57 = vpop.eup %1352 }
 0x4e0   : > { %v695_v58 = vpop.f32.mrf.mxu1 }
 0x4e1   : > { %v701_v59 = vmul.f32 %v1353_v57, %v695_v58 }
 0x4e2   : > { %v1217_v60 = vpop.f32.mrf.mxu1  ;;  %710 = sbr.rel (%p1148_p0) target bundleno = 2305 (0x901), region = 76 }
 0x4e3   : > { %v702_v61 = vpack.c.bf16 %v701_v59, %v701_v59 }
 0x4e4   : > { %v698_v62 = vpop.f32.mrf.mxu1 }
 0x4e5   : > { %706 = vst.msk [vmem:[%s704_s2] sm:$0xf] %vm705_vm6, %v702_v61 }
 0x4e6   : > { %v1218_v63 = vpop.f32.mrf.mxu1 }
 0x4e7   : > { %v1483_v3 = vmov 0.0   ;;  %v1357_v4 = vld [vmem:[%s1809_s4 + $0x8] sm:$0xff]   ;;  %v1358_v5 = vld [vmem:[%s1809_s4] sm:$0xff]   ;;  %vm1486_vm7 = vmmov 0   ;;  %vm738_vm8 = vcmask 130048   ;;  %vm741_vm9 = vcmask 195584  }
 0x4e8   : > { %1219 = vmatprep.subr.bf16.mxu1 %v1483_v3  ;;  %1235 = vmatprep.subr.bf16.mxu0 %v1483_v3  ;;  %vm760_vm10 = vcmask 261120   ;;  %v711_v13 = vld [vmem:[%s1632_s14] sm:$0xf]  ;;  %v1359_v28 = vld [vmem:[%s1813_s8 + $0x8] sm:$0xff]   ;;  %v1361_v30 = vld [vmem:[%s1815_s10 + $0x38] sm:$0xff]   ;;  %vm1029_vm11 = vcmask 257024  }
 0x4e9   : > { %1220 = vmatpush3.bf16.msra.mxu1 %v1357_v4  ;;  %1223 = vmatprep.mubr.msk.bf16.mxu1 %vm1486_vm7, %v1483_v3  ;;  %v712_v14 = vunpack.c.l.bf16 %v711_v13  ;;  %v1155_v16 = vld [vmem:[%s1810_s5] ss:$0 sm:$0xff]  ;;  %v1362_v31 = vld [vmem:[%s1815_s10 + $0x30] sm:$0xff]   ;;  %v1363_v42 = vld [vmem:[%s1815_s10 + $0x28] sm:$0xff]  }
 0x4ea   : > { %1221 = vmatprep.subr.bf16.mxu1 %v1483_v3  ;;  %1251 = vmatprep.mubr.msk.bf16.mxu0 %vm1486_vm7, %v1483_v3  ;;  %v1360_v29 = vld [vmem:[%s1813_s8] sm:$0xff]   ;;  %v1365_v44 = vld [vmem:[%s1815_s10 + $0x18] sm:$0xff]   ;;  %v1366_v45 = vld [vmem:[%s1815_s10 + $0x10] sm:$0xff]  }
 0x4eb   : > { %1236 = vmatpush3.bf16.msra.mxu0 %v1361_v30  ;;  %v1156_v36 = vld [vmem:[%s1811_s6] ss:$0 sm:$0xff]  ;;  %v1367_v46 = vld [vmem:[%s1815_s10 + $0x8] sm:$0xff]  }
 0x4ec   : > { %v1354_v0 = vld [vmem:[#allocation3 + $0x4] ss:$0 sps:$4 sm:$0xff]   ;;  %v1355_v1 = vld [vmem:[#allocation3 + $0x8] ss:$0 sps:$4 sm:$0xff]   ;;  %v1356_v2 = vld [vmem:[#allocation3 + $0xc] ss:$0 sps:$4 sm:$0xff]   ;;  %1237 = vmatprep.subr.bf16.mxu0 %v1483_v3 }
 0x4ed   : > { %723 = vrot.lane.b32.xlu0 %v1354_v0, %s1482_s17  ;;  %733 = vrot.lane.b32.xlu1 %v1356_v2, %s1484_s30  ;;  %v713_v7 = vld [vmem:[#allocation3] sm:$0xf]  ;;  %v1157_v38 = vld [vmem:[%s1812_s7] ss:$0 sm:$0xff] }
 0x4ee   : > { %1222 = vmatpush3.bf16.msra.mxu1 %v1358_v5  ;;  %v1364_v43 = vld [vmem:[%s1815_s10 + $0x20] sm:$0xff]  }
 0x4ef   : > { %1227 = vmatprep.subr.bf16.mxu1 %v1483_v3  ;;  %1238 = vmatpush3.bf16.msra.mxu0 %v1362_v31  ;;  %v1368_v47 = vld [vmem:[%s1815_s10] sm:$0xff]  }
 0x4f0   : > { %1239 = vmatprep.subr.bf16.mxu0 %v1483_v3  ;;  %v1159_v48 = vld [vmem:[%s1814_s9] ss:$0 sm:$0xff] }
 0x4f1   : > { %728 = vrot.lane.b32.xlu0 %v1355_v1, %s1485_s13  ;;  %v1158_v60 = vld [vmem:[%s1816_s11] ss:$0 sm:$0xff] }
 0x4f3   : > { %1240 = vmatpush3.bf16.msra.mxu0 %v1363_v42 }
 0x4f4   : > { %1241 = vmatprep.subr.bf16.mxu0 %v1483_v3 }
 0x4f7   : > { %1242 = vmatpush3.bf16.msra.mxu0 %v1364_v43 }
 0x4f8   : > { %1243 = vmatprep.subr.bf16.mxu0 %v1483_v3 }
 0x4fb   : > { %1244 = vmatpush3.bf16.msra.mxu0 %v1365_v44 }
 0x4fc   : > { %1245 = vmatprep.subr.bf16.mxu0 %v1483_v3 }
 0x4ff   : > { %1246 = vmatpush3.bf16.msra.mxu0 %v1366_v45 }
 0x500   : > { %1247 = vmatprep.subr.bf16.mxu0 %v1483_v3 }
 0x503   : > { %1248 = vmatpush3.bf16.msra.mxu0 %v1367_v46 }
 0x504   : > { %1249 = vmatprep.subr.bf16.mxu0 %v1483_v3 }
 0x507   : > { %1250 = vmatpush3.bf16.msra.mxu0 %v1368_v47 }
 0x55f   : > { %v724_v6 = vpop.permute.xlu0 %723  ;;  %v734_v8 = vpop.permute.xlu1 %733 }
 0x560   : > { %v737_v9 = vsel %vm596_vm3, %v713_v7, %v724_v6 }
 0x563   : > { %v729_v10 = vpop.permute.xlu0 %728 }
 0x564   : > { %v740_v11 = vsel %vm738_vm8, %v737_v9, %v729_v10 }
 0x565   : > { %v743_v12 = vsel %vm741_vm9, %v740_v11, %v734_v8 }
 0x566   : > { %1224 = vmatmul.mubr.msk.bf16.vlgmr.msra.gmra.mxu1 %vm760_vm10, %v743_v12 }
 0x567   : > { %1231 = vmatprep.mubr.msk.bf16.mxu1 %vm1486_vm7, %v1483_v3  ;;  %1228 = vmatpush3.bf16.msra.mxu1 %v1359_v28 }
 0x568   : > { %1229 = vmatprep.subr.bf16.mxu1 %v1483_v3 }
 0x56b   : > { %1230 = vmatpush3.bf16.msra.mxu1 %v1360_v29 }
 0x626   : > { %v797_v15 = vpop.f32.mrf.mxu1 }
 0x627   : > { %v803_v17 = vadd.f32 %v797_v15, %v712_v14 }
 0x628   : > { %v1225_v18 = vpop.f32.mrf.mxu1 }
 0x629   : > { %v1697_v19 = vadd.f32 %v1155_v16, %v803_v17 }
 0x62a   : > { %v800_v20 = vpop.f32.mrf.mxu1 }
 0x62b   : > { %v814_v21 = vsel %vm760_vm10, %v1697_v19, 0.0  ;;  %v850_v61 = vadd.f32 %v1158_v60, %v1697_v19 }
 0x62c   : > { %v1226_v22 = vpop.f32.mrf.mxu1  ;;  %815 = vadd.xlane.f32.xlu1 %v814_v21 }
 0x6b5   : > { %v816_v23 = vpop.xlane.xlu1 %815 }
 0x6b6   : > { %v818_v24 = vmul.f32 0.03125, %v816_v23 }
 0x6b8   : > { %v819_v25 = vsub.f32 %v1697_v19, %v818_v24 }
 0x6ba   : > { %v820_v26 = vmul.f32 %v819_v25, %v819_v25 }
 0x6bc   : > { %v821_v27 = vsel %vm760_vm10, %v820_v26, 0.0 }
 0x6bd   : > { %822 = vadd.xlane.f32.xlu0 %v821_v27 }
 0x746   : > { %v823_v32 = vpop.xlane.xlu0 %822 }
 0x747   : > { %v824_v33 = vmul.f32 0.03125, %v823_v32 }
 0x749   : > { %v825_v34 = vadd.f32 1e-05, %v824_v33 }
 0x74b   : > { %1369 = vrsqrt.f32 %v825_v34 }
 0x758   : > { %v1370_v35 = vpop.eup %1369 }
 0x759   : > { %v827_v37 = vmul.f32 %v1370_v35, %v819_v25 }
 0x75b   : > { %v834_v39 = vmul.f32 %v1156_v36, %v827_v37 }
 0x75d   : > { %v841_v40 = vadd.f32 %v1157_v38, %v834_v39 }
 0x75f   : > { %v842_v41 = vpack.c.bf16 %v841_v40, %v841_v40 }
 0x761   : > { %1232 = vmatmul.mubr.msk.bf16.vlgmr.msra.gmra.mxu1 %vm760_vm10, %v842_v41 }
 0x821   : > { %v911_v49 = vpop.f32.mrf.mxu1 }
 0x822   : > { %v912_v50 = vadd.f32 %v1159_v48, %v911_v49 }
 0x823   : > { %v1233_v51 = vpop.f32.mrf.mxu1 }
 0x824   : > { %v918_v52 = vmul.f32 0.70710677, %v912_v50  ;;  %v917_v56 = vmul.f32 0.5, %v912_v50 }
 0x825   : > { %v914_v53 = vpop.f32.mrf.mxu1 }
 0x826   : > { %1371 = verf.f32 %v918_v52 }
 0x827   : > { %v1234_v54 = vpop.f32.mrf.mxu1 }
 0x833   : > { %v1372_v55 = vpop.eup %1371 }
 0x834   : > { %v920_v57 = vadd.f32 1.0, %v1372_v55 }
 0x836   : > { %v921_v58 = vmul.f32 %v920_v57, %v917_v56 }
 0x838   : > { %v922_v59 = vpack.c.bf16 %v921_v58, %v921_v58 }
 0x83a   : > { %1252 = vmatmul.mubr.bf16.vlgmr.msra.gmra.mxu0 %v922_v59 }
 0x8fa   : > { %v1021_v62 = vpop.f32.mrf.mxu0 }
 0x8fb   : > { %v1027_v63 = vadd.f32 %v1021_v62, %v850_v61 }
 0x8fc   : > { %v1253_v0 = vpop.f32.mrf.mxu0 }
 0x8fd   : > { %v1028_v1 = vpack.c.bf16 %v1027_v63, %v1027_v63 }
 0x8fe   : > { %v1024_v2 = vpop.f32.mrf.mxu0 }
 0x8ff   : > { %1030 = vst.msk [vmem:[%s1834_s20] sm:$0xf] %vm1029_vm11, %v1028_v1 }
 0x900   : > { %v1254_v3 = vpop.f32.mrf.mxu0 }
 0x901 PF: > { %s1172_s18 = sshll.u32 %s1453_s25, 6  ;;  %s1835_s13 = scalar_lea.vmem [#allocation4], %s1626_s29 }
 0x902   : > { %s1043_s24 = scalar_lea.hbm %s1817_s12, %s1172_s18  ;;  %s1045_s16 = sshll.u32 %s1835_s13, 4  ;;  %s1046_s16 = int_to_ptr.vmem [resolvable:$true] %s1045_s16 }
 0x903   : > { %s1836_s0 = sand.u32 1, %s1441_s22   ;;  %s1373_s1 = scalar_lea.vmem %s1046_s16, 64 }
 0x904   : > { %s1032_s14 = scalar_lea.sflag [#allocation5], %s1836_s0  ;;  %p1374_p1 = scmp.ne.s32.totalorder %s1046_s16, %s1373_s1 }
 0x905   : > { %s1487_s2 = smov [#allocation4]  }
 0x906   : > { %p1375_p2 = pnand %p1374_p1, %p1602_p3  ;;  %s1377_s17 = sshll.u32 %s1487_s2, 4  ;;  %s1378_s17 = int_to_ptr.vmem [resolvable:$false] %s1377_s17 }
 0x907   : > { %s1379_s20 = scalar_lea.vmem %s1378_s17, 128  ;;  %p1380_p5 = scmp.lt.s32.totalorder %s1046_s16, %s1378_s17 }
 0x908   : > { %p1376_p4 = pneg %p1375_p2  ;;  %p1381_p6 = scmp.lt.s32.totalorder %s1379_s20, %s1373_s1 }
 0x90a   : > { %p1382_p7 = por %p1381_p6, %p1380_p5 }
 0x90c   : > { %p1383_p8 = pnand %p1382_p7, %p1376_p4 }
 0x90e   : > { %1386 = shalt.err (!%p1383_p8)
}
 0x90f   : > { %s1387_s25 = scalar_lea.hbm %s1043_s24, 64  ;;  %s1391_s30 = scalar_lea.hbm %s1817_s12, 128 }
 0x910   : > { %p1388_p10 = scmp.ne.s32.totalorder %s1043_s24, %s1387_s25  ;;  %p1392_p13 = scmp.lt.s32.totalorder %s1043_s24, %s1817_s12 }
 0x911   : > { %p1393_p0 = scmp.lt.s32.totalorder %s1391_s30, %s1387_s25 }
 0x912   : > { %p1389_p11 = pnand %p1388_p10, %p1602_p3 }
 0x913   : > { %p1394_p1 = por %p1393_p0, %p1392_p13 }
 0x914   : > { %p1390_p12 = pneg %p1389_p11 }
 0x916   : > { %p1395_p2 = pnand %p1394_p1, %p1390_p12 }
 0x918   : > { %1398 = shalt.err (!%p1395_p2)
}
 0x919   : > { %1255 = dma.vmem_to_hbm [thread:$0]  (%p1602_p3), %s1046_s16, 64, %s1043_s24, %s1032_s14  }
 0x91a PF: > { %p1261_p4 = scmp.ge.s32.totalorder %s1465_s28, 2  ;;  %s1057_s1 = sand.u32 1, %s1437_s21  }
 0x91b   : > { %s1058_s2 = scalar_lea.sflag [#allocation5], %s1057_s1 }
 0x91c   : > { %p1258_p5 = pnand %p1261_p4, %p1612_p9 }
 0x91e   : > { %p1259_p6 = pneg %p1258_p5 }
 0x920   : > { %1432 = dma.done.wait (%p1259_p6), %s1058_s2, 64  }
 0x921   : > { %1434 = vsyncadd (%p1259_p6), %s1058_s2, 4294967232  ;;  %s25_s28 = sadd.s32 1, %s1465_s28   ;;  %s1838_s24 = sld [smem:[#allocation7_spill]] }
 0x922   : > { %p22_p7 = scmp.ge.s32.totalorder %s25_s28, 10   ;;  %s1839_s26 = sld [smem:[#allocation8_spill]] }
 0x923   : > { %s1840_s15 = sld [smem:[#allocation9_spill]]  ;;  %s1841_s21 = smov %s1441_s22 }
 0x924   : > { %s1842_s22 = smov %s1445_s23  ;;  %s1843_s23 = smov %s1620_s19 }
 0x925   : > { %s1844_s25 = smov %s1461_s27  ;;  %24 = sbr.rel (!%p22_p7) target bundleno = 9 (0x9), region = 129 }
 0x929   : > { %s1845_s27 = smov %s1840_s15 }
 0x92a   :  { %1063 = vsyncpa [#allocation5], 1 }
 0x92b   :  { %1065 = vsyncpa [#allocation5 + $0x1], 1 }

</bundles_post_ra>
